<compile_context>
chip_gen: v6e
topology: v6e:2x2x1
jax: 0.10.0
libtpu: 0.0.40
codegen_flags: <defaults>
</compile_context>

<pallas_src>
import functools

import jax
import jax.numpy as jnp
from jax.experimental import pallas as pl
from jax.experimental.pallas import tpu as pltpu

EPS = 1e-5

# Row layout of the constant weight slab (1152, 128):
#   rows    0: 896, lanes 0:32  -> conv2 weights (K padded 832 -> 896), rows = (c,h,w)
#   rows  896:1024, lanes 0:32  -> conv1 weights (K padded 117 -> 128), rows = (c,kh,kw)
#   rows 1024:1152, lanes 0:16  -> conv3 weights, rows = (kh,kw,c)
#   rows    0:  12, lanes 64:96 -> 12 packed per-channel parameter vectors
_W1_ROW = 896
_W3_ROW = 1024
_PRM_LANE = 64


def _round_up(v, m):
    return (v + m - 1) // m * m


def fused_forward_kernel(acts_ref, wts_ref, out_ref, *, n, r_pad, cb):
    """Whole CustomNet forward, grid=().

    acts_ref: (4*r_pad + 7*cb, 128) f32
        rows [0, 4*r_pad): conv1 im2col patches, 4 pool-quadrant blocks of r_pad rows
            (9n valid, zero pad), rows within a block ordered (ph, pw, sample),
            features (c, kh, kw) zero-padded 117 -> 128.
        rows [4*r_pad, ..): 7 blocks of cb rows (n valid), block j holding lanes
            [128j, 128j+128) of the flattened (c,h,w) 8x8x13 field per sample.
    wts_ref : (1152, 128) f32 constant weight/param slab (layout above).
    out_ref : (cb, 128)  f32, sigmoid broadcast across lanes (lane-dense store).
    """
    r = 9 * n                 # valid rows per pool quadrant
    q = 4 * r_pad             # first row of the conv2 field chunks

    def prm(i, width):        # packed per-channel params, one row each
        return wts_ref[i:i + 1, _PRM_LANE:_PRM_LANE + width]

    b1, g1, be1 = prm(0, 32), prm(1, 32), prm(2, 32)
    b2, g2, be2 = prm(3, 32), prm(4, 32), prm(5, 32)
    b3, g3, be3 = prm(6, 16), prm(7, 16), prm(8, 16)
    wlA, wlB, bl = prm(9, 32), prm(10, 16), prm(11, 1)

    # ---- group1: conv3x3 as one stacked matmul + fused 2x2/s2 max-pool ----
    w1 = wts_ref[_W1_ROW:_W1_ROW + 128, 0:32]                          # (128, 32)
    c1 = jnp.dot(acts_ref[0:q, :], w1, preferred_element_type=jnp.float32)
    pooled1 = jnp.maximum(jnp.maximum(c1[0:r_pad], c1[r_pad:2 * r_pad]),
                          jnp.maximum(c1[2 * r_pad:3 * r_pad],
                                      c1[3 * r_pad:4 * r_pad])) + b1   # (r_pad, 32)
    # train-mode BatchNorm with masked stats over the 9n valid rows (pad rows excluded)
    row = jax.lax.broadcasted_iota(jnp.int32, (r_pad, 32), 0)
    msk = (row < r).astype(jnp.float32)
    inv_r = 1.0 / float(r)
    mu1 = jnp.sum(pooled1 * msk, axis=0, keepdims=True) * inv_r
    d1 = (pooled1 - mu1) * msk
    var1 = jnp.sum(d1 * d1, axis=0, keepdims=True) * inv_r
    x1 = jnp.maximum((pooled1 - mu1) * jax.lax.rsqrt(var1 + EPS) * g1 + be1, 0.0)

    # ---- group2: conv8x8 as 7 chunked dots (sum over the 896-wide contraction) ----
    c2 = jnp.dot(acts_ref[q:q + cb, :], wts_ref[0:128, 0:32],
                 preferred_element_type=jnp.float32)
    for j in range(1, 7):
        c2 = c2 + jnp.dot(acts_ref[q + cb * j:q + cb * (j + 1), :],
                          wts_ref[128 * j:128 * (j + 1), 0:32],
                          preferred_element_type=jnp.float32)
    c2 = c2[0:n] + b2                                                  # (n, 32)
    mu2 = jnp.mean(c2, axis=0, keepdims=True)
    var2 = jnp.mean((c2 - mu2) ** 2, axis=0, keepdims=True)
    x2 = jnp.maximum((c2 - mu2) * jax.lax.rsqrt(var2 + EPS) * g2 + be2, 0.0)

    # ---- group3: conv2x2 im2col built as a value (no scratch stores) ----
    # rows: 4 pool positions x n samples; lanes: 4 taps x 32 channels.
    w3 = wts_ref[_W3_ROW:_W3_ROW + 128, 0:16]                          # (128, 16)
    blocks = []
    for oh in (0, 1):
        for ow in (0, 1):
            taps = [x1[((oh + kh) * 3 + (ow + kw)) * n:
                       ((oh + kh) * 3 + (ow + kw)) * n + n, :]
                    for kh in (0, 1) for kw in (0, 1)]
            blocks.append(jnp.concatenate(taps, axis=1))               # (n, 128)
    p3 = jnp.concatenate(blocks, axis=0)                               # (4n, 128)
    c3 = jnp.dot(p3, w3, preferred_element_type=jnp.float32)           # (4n, 16)
    pooled3 = jnp.maximum(jnp.maximum(c3[0:n], c3[n:2 * n]),
                          jnp.maximum(c3[2 * n:3 * n], c3[3 * n:4 * n])) + b3
    mu3 = jnp.mean(pooled3, axis=0, keepdims=True)
    var3 = jnp.mean((pooled3 - mu3) ** 2, axis=0, keepdims=True)
    x3 = jnp.maximum((pooled3 - mu3) * jax.lax.rsqrt(var3 + EPS) * g3 + be3, 0.0)

    # ---- concat + Linear(48, 1) + sigmoid(z / 100) ----
    # cat(x2, x3) @ wl.T split into two lane reductions (x2 hits wl[:, :32]).
    lin = (jnp.sum(x2 * wlA, axis=1, keepdims=True)
           + jnp.sum(x3 * wlB, axis=1, keepdims=True) + bl)            # (n, 1)
    sig = pl.reciprocal(1.0 + jnp.exp(-lin * (1.0 / 100.0)), approx=True)

    rows_out = out_ref.shape[0]
    tile = jnp.broadcast_to(sig, (n, 128))
    if rows_out > n:
        tile = jnp.concatenate(
            [tile, jnp.zeros((rows_out - n, 128), jnp.float32)], axis=0)
    out_ref[...] = tile                                                # unmasked full-tile store


# ----------------------------------------------------------------------------
# JAX glue
# ----------------------------------------------------------------------------
def prepare_params(params):
    """One-time packing of every weight / per-channel parameter into one slab."""
    w1 = jnp.asarray(params["w1"], jnp.float32).reshape(32, 117).T      # rows (c,kh,kw)
    w2 = jnp.asarray(params["w2"], jnp.float32).reshape(32, 832).T      # rows (c,h,w)
    w3 = jnp.asarray(params["w3"], jnp.float32).transpose(2, 3, 1, 0).reshape(128, 16)

    wts = jnp.zeros((1152, 128), jnp.float32)
    wts = wts.at[0:832, 0:32].set(w2)
    wts = wts.at[_W1_ROW:_W1_ROW + 117, 0:32].set(w1)
    wts = wts.at[_W3_ROW:_W3_ROW + 128, 0:16].set(w3)

    vecs = [params["b1"], params["g1"], params["be1"],
            params["b2"], params["g2"], params["be2"],
            params["b3"], params["g3"], params["be3"],
            params["wl"][:, :32], params["wl"][:, 32:], params["bl"]]
    for i, v in enumerate(vecs):
        v = jnp.asarray(v, jnp.float32).reshape(-1)
        wts = wts.at[i, _PRM_LANE:_PRM_LANE + v.shape[0]].set(v)
    return {"wts": wts}


def custom_net_forward(x_nchw, prep):
    """CustomNet forward. x_nchw: (N, 13, 8, 8) f32, prep: prepare_params(...)."""
    n = x_nchw.shape[0]
    x = x_nchw.astype(jnp.float32)
    r = 9 * n
    r_pad = _round_up(r, 8)            # sublane-aligned quadrant blocks
    cb = _round_up(n, 8)               # sublane-aligned conv2 chunk blocks / output rows

    # conv1 im2col: channel-major features (c, kh, kw); pad 117->128 BEFORE the
    # big transpose so the rearrangement copy has a lane-aligned 128 minor dim.
    cols = [x[:, :, i:i + 6, j:j + 6] for i in range(3) for j in range(3)]
    p = jnp.stack(cols, axis=2)                                        # (N,13,9,6,6)
    p = jnp.transpose(p, (0, 3, 4, 1, 2)).reshape(n, 6, 6, 117)
    p = jnp.pad(p, ((0, 0), (0, 0), (0, 0), (0, 11)))                  # (N,6,6,128)
    p = p.reshape(n, 3, 2, 3, 2, 128)
    p = jnp.transpose(p, (2, 4, 1, 3, 0, 5)).reshape(4, r, 128)        # (quad, ph*pw*n, f)
    p1 = jnp.pad(p, ((0, 0), (0, r_pad - r), (0, 0))).reshape(4 * r_pad, 128)

    # conv2 field: (c,h,w)-ordered 832-vector per sample, 7 lane-chunks of 128,
    # each chunk block padded to cb rows (zeros contribute nothing to the dot).
    flat = jnp.pad(x.reshape(n, 832), ((0, 0), (0, 64)))               # (N, 896)
    chunks = jnp.transpose(flat.reshape(n, 7, 128), (1, 0, 2))         # (7, N, 128)
    chunks = jnp.pad(chunks, ((0, 0), (0, cb - n), (0, 0))).reshape(7 * cb, 128)

    acts = jnp.concatenate([p1, chunks], axis=0)                       # (4*r_pad+7*cb, 128)

    kern = functools.partial(fused_forward_kernel, n=n, r_pad=r_pad, cb=cb)
    flops = 2 * (4 * r_pad * 128 * 32 + 7 * cb * 128 * 32 + 4 * n * 128 * 16)
    bytes_accessed = 4 * (acts.size + 1152 * 128 + cb * 128)
    vmem = functools.partial(pl.BlockSpec, memory_space=pltpu.MemorySpace.VMEM)

    out = pl.pallas_call(
        kern,
        out_shape=jax.ShapeDtypeStruct((cb, 128), jnp.float32),
        in_specs=[vmem(), vmem()],
        out_specs=vmem(),
        cost_estimate=pl.CostEstimate(flops=flops, transcendentals=4 * n + 96,
                                      bytes_accessed=bytes_accessed),
    )(acts, prep["wts"])
    return out[:n, :1]                                                 # (n, 1)


# ----------------------------------------------------------------------------
# Deterministic parameter construction (PyTorch-style uniform fan-in init)
# ----------------------------------------------------------------------------
def make_params(key):
    ks = jax.random.split(key, 8)

    def conv_init(kw_, kb_, oc, ic, k):
        bound = 1.0 / float(ic * k * k) ** 0.5
        w = jax.random.uniform(kw_, (oc, ic, k, k), jnp.float32, -bound, bound)
        b = jax.random.uniform(kb_, (1, oc), jnp.float32, -bound, bound)
        return w, b

    w1, b1 = conv_init(ks[0], ks[1], 32, 13, 3)
    w2, b2 = conv_init(ks[2], ks[3], 32, 13, 8)
    w3, b3 = conv_init(ks[4], ks[5], 16, 32, 2)

    bound_l = 1.0 / float(48) ** 0.5
    wl = jax.random.uniform(ks[6], (1, 48), jnp.float32, -bound_l, bound_l)
    bl = jax.random.uniform(ks[7], (1, 1), jnp.float32, -bound_l, bound_l)

    return {
        "w1": w1, "b1": b1, "g1": jnp.ones((1, 32), jnp.float32), "be1": jnp.zeros((1, 32), jnp.float32),
        "w2": w2, "b2": b2, "g2": jnp.ones((1, 32), jnp.float32), "be2": jnp.zeros((1, 32), jnp.float32),
        "w3": w3, "b3": b3, "g3": jnp.ones((1, 16), jnp.float32), "be3": jnp.zeros((1, 16), jnp.float32),
        "wl": wl, "bl": bl,
    }


if __name__ == "__main__":
    root = jax.random.PRNGKey(0)
    k_x, k_p = jax.random.split(root)

    # Input must be 8x8 spatial for the module's shapes to be consistent.
    x = jax.random.normal(k_x, (2, 13, 8, 8), jnp.float32)
    params = make_params(k_p)
    prep = prepare_params(params)      # one-time weight/param packing (off the hot path)

    fwd = jax.jit(custom_net_forward)
    y = fwd(x, prep)
    jax.block_until_ready(y)
    assert y.shape == (2, 1)
    print("KERNEL_OK")
</pallas_src>

<mosaic_0001>
module attributes {stable_mosaic.version = 11 : i64} {
  func.func @fused_forward_kernel(%arg0: memref<152x128xf32, #tpu.memory_space<vmem>>, %arg1: memref<1152x128xf32, #tpu.memory_space<vmem>>, %arg2: memref<8x128xf32, #tpu.memory_space<vmem>>) attributes {dimension_semantics = [], scalar_prefetch = 0 : i64, scratch_operands = 0 : i64, tpu.core_type = #tpu.core_type<tc>} {
    %c0 = arith.constant 0 : index
    %c64 = arith.constant 64 : index
    %0 = vector.load %arg1[%c0, %c64] : memref<1152x128xf32, #tpu.memory_space<vmem>>, vector<1x32xf32>
    %c1 = arith.constant 1 : index
    %c64_0 = arith.constant 64 : index
    %1 = vector.load %arg1[%c1, %c64_0] : memref<1152x128xf32, #tpu.memory_space<vmem>>, vector<1x32xf32>
    %c2 = arith.constant 2 : index
    %c64_1 = arith.constant 64 : index
    %2 = vector.load %arg1[%c2, %c64_1] : memref<1152x128xf32, #tpu.memory_space<vmem>>, vector<1x32xf32>
    %c3 = arith.constant 3 : index
    %c64_2 = arith.constant 64 : index
    %3 = vector.load %arg1[%c3, %c64_2] : memref<1152x128xf32, #tpu.memory_space<vmem>>, vector<1x32xf32>
    %c4 = arith.constant 4 : index
    %c64_3 = arith.constant 64 : index
    %4 = vector.load %arg1[%c4, %c64_3] : memref<1152x128xf32, #tpu.memory_space<vmem>>, vector<1x32xf32>
    %c5 = arith.constant 5 : index
    %c64_4 = arith.constant 64 : index
    %5 = vector.load %arg1[%c5, %c64_4] : memref<1152x128xf32, #tpu.memory_space<vmem>>, vector<1x32xf32>
    %c6 = arith.constant 6 : index
    %c64_5 = arith.constant 64 : index
    %6 = vector.load %arg1[%c6, %c64_5] : memref<1152x128xf32, #tpu.memory_space<vmem>>, vector<1x16xf32>
    %c7 = arith.constant 7 : index
    %c64_6 = arith.constant 64 : index
    %7 = vector.load %arg1[%c7, %c64_6] : memref<1152x128xf32, #tpu.memory_space<vmem>>, vector<1x16xf32>
    %c8 = arith.constant 8 : index
    %c64_7 = arith.constant 64 : index
    %8 = vector.load %arg1[%c8, %c64_7] : memref<1152x128xf32, #tpu.memory_space<vmem>>, vector<1x16xf32>
    %c9 = arith.constant 9 : index
    %c64_8 = arith.constant 64 : index
    %9 = vector.load %arg1[%c9, %c64_8] : memref<1152x128xf32, #tpu.memory_space<vmem>>, vector<1x32xf32>
    %c10 = arith.constant 10 : index
    %c64_9 = arith.constant 64 : index
    %10 = vector.load %arg1[%c10, %c64_9] : memref<1152x128xf32, #tpu.memory_space<vmem>>, vector<1x16xf32>
    %c11 = arith.constant 11 : index
    %c64_10 = arith.constant 64 : index
    %11 = vector.load %arg1[%c11, %c64_10] : memref<1152x128xf32, #tpu.memory_space<vmem>>, vector<1x1xf32>
    %c896 = arith.constant 896 : index
    %c0_11 = arith.constant 0 : index
    %12 = vector.load %arg1[%c896, %c0_11] : memref<1152x128xf32, #tpu.memory_space<vmem>>, vector<128x32xf32>
    %c0_12 = arith.constant 0 : index
    %c0_13 = arith.constant 0 : index
    %13 = vector.load %arg0[%c0_12, %c0_13] : memref<152x128xf32, #tpu.memory_space<vmem>>, vector<96x128xf32>
    %cst = arith.constant dense<0.000000e+00> : vector<96x32xf32>
    %14 = tpu.matmul %13, %12, %cst {dimension_numbers = #tpu.dot_dimension_numbers<[1], [0], [0], [1], [0, 0, 1, 1], [], []>} : vector<96x128xf32>, vector<128x32xf32>, vector<96x32xf32> -> vector<96x32xf32>
    %15 = vector.extract_strided_slice %14 {offsets = [0, 0], sizes = [24, 32], strides = [1, 1]} : vector<96x32xf32> to vector<24x32xf32>
    %16 = vector.extract_strided_slice %14 {offsets = [24, 0], sizes = [24, 32], strides = [1, 1]} : vector<96x32xf32> to vector<24x32xf32>
    %17 = arith.maximumf %15, %16 : vector<24x32xf32>
    %18 = vector.extract_strided_slice %14 {offsets = [48, 0], sizes = [24, 32], strides = [1, 1]} : vector<96x32xf32> to vector<24x32xf32>
    %19 = vector.extract_strided_slice %14 {offsets = [72, 0], sizes = [24, 32], strides = [1, 1]} : vector<96x32xf32> to vector<24x32xf32>
    %20 = arith.maximumf %18, %19 : vector<24x32xf32>
    %21 = arith.maximumf %17, %20 : vector<24x32xf32>
    %22 = vector.broadcast %0 : vector<1x32xf32> to vector<24x32xf32>
    %23 = arith.addf %21, %22 : vector<24x32xf32>
    %24 = tpu.iota {dimensions = array<i32: 0>} : vector<24x32xi32>
    %c18_i32 = arith.constant 18 : i32
    %25 = vector.broadcast %c18_i32 : i32 to vector<24x32xi32>
    %26 = arith.cmpi slt, %24, %25 : vector<24x32xi32>
    %27 = arith.extui %26 : vector<24x32xi1> to vector<24x32xi32>
    %28 = arith.sitofp %27 : vector<24x32xi32> to vector<24x32xf32>
    %29 = arith.mulf %23, %28 : vector<24x32xf32>
    %cst_14 = arith.constant dense<0.000000e+00> : vector<32xf32>
    %30 = vector.multi_reduction <add>, %29, %cst_14 [0] : vector<24x32xf32> to vector<32xf32>
    %31 = vector.shape_cast %30 : vector<32xf32> to vector<1x32xf32>
    %cst_15 = arith.constant 0.055555556 : f32
    %32 = vector.broadcast %cst_15 : f32 to vector<1x32xf32>
    %33 = arith.mulf %31, %32 : vector<1x32xf32>
    %34 = vector.broadcast %33 : vector<1x32xf32> to vector<24x32xf32>
    %35 = arith.subf %23, %34 : vector<24x32xf32>
    %36 = arith.mulf %35, %28 : vector<24x32xf32>
    %37 = arith.mulf %36, %36 : vector<24x32xf32>
    %cst_16 = arith.constant dense<0.000000e+00> : vector<32xf32>
    %38 = vector.multi_reduction <add>, %37, %cst_16 [0] : vector<24x32xf32> to vector<32xf32>
    %39 = vector.shape_cast %38 : vector<32xf32> to vector<1x32xf32>
    %cst_17 = arith.constant 0.055555556 : f32
    %40 = vector.broadcast %cst_17 : f32 to vector<1x32xf32>
    %41 = arith.mulf %39, %40 : vector<1x32xf32>
    %42 = vector.broadcast %33 : vector<1x32xf32> to vector<24x32xf32>
    %43 = arith.subf %23, %42 : vector<24x32xf32>
    %cst_18 = arith.constant 9.99999974E-6 : f32
    %44 = vector.broadcast %cst_18 : f32 to vector<1x32xf32>
    %45 = arith.addf %41, %44 : vector<1x32xf32>
    %46 = math.rsqrt %45 : vector<1x32xf32>
    %47 = vector.broadcast %46 : vector<1x32xf32> to vector<24x32xf32>
    %48 = arith.mulf %43, %47 : vector<24x32xf32>
    %49 = vector.broadcast %1 : vector<1x32xf32> to vector<24x32xf32>
    %50 = arith.mulf %48, %49 : vector<24x32xf32>
    %51 = vector.broadcast %2 : vector<1x32xf32> to vector<24x32xf32>
    %52 = arith.addf %50, %51 : vector<24x32xf32>
    %cst_19 = arith.constant 0.000000e+00 : f32
    %53 = vector.broadcast %cst_19 : f32 to vector<24x32xf32>
    %54 = arith.maximumf %52, %53 : vector<24x32xf32>
    %c96 = arith.constant 96 : index
    %c0_20 = arith.constant 0 : index
    %55 = vector.load %arg0[%c96, %c0_20] : memref<152x128xf32, #tpu.memory_space<vmem>>, vector<8x128xf32>
    %c0_21 = arith.constant 0 : index
    %c0_22 = arith.constant 0 : index
    %56 = vector.load %arg1[%c0_21, %c0_22] : memref<1152x128xf32, #tpu.memory_space<vmem>>, vector<128x32xf32>
    %cst_23 = arith.constant dense<0.000000e+00> : vector<8x32xf32>
    %57 = tpu.matmul %55, %56, %cst_23 {dimension_numbers = #tpu.dot_dimension_numbers<[1], [0], [0], [1], [0, 0, 1, 1], [], []>} : vector<8x128xf32>, vector<128x32xf32>, vector<8x32xf32> -> vector<8x32xf32>
    %c104 = arith.constant 104 : index
    %c0_24 = arith.constant 0 : index
    %58 = vector.load %arg0[%c104, %c0_24] : memref<152x128xf32, #tpu.memory_space<vmem>>, vector<8x128xf32>
    %c128 = arith.constant 128 : index
    %c0_25 = arith.constant 0 : index
    %59 = vector.load %arg1[%c128, %c0_25] : memref<1152x128xf32, #tpu.memory_space<vmem>>, vector<128x32xf32>
    %cst_26 = arith.constant dense<0.000000e+00> : vector<8x32xf32>
    %60 = tpu.matmul %58, %59, %cst_26 {dimension_numbers = #tpu.dot_dimension_numbers<[1], [0], [0], [1], [0, 0, 1, 1], [], []>} : vector<8x128xf32>, vector<128x32xf32>, vector<8x32xf32> -> vector<8x32xf32>
    %61 = arith.addf %57, %60 : vector<8x32xf32>
    %c112 = arith.constant 112 : index
    %c0_27 = arith.constant 0 : index
    %62 = vector.load %arg0[%c112, %c0_27] : memref<152x128xf32, #tpu.memory_space<vmem>>, vector<8x128xf32>
    %c256 = arith.constant 256 : index
    %c0_28 = arith.constant 0 : index
    %63 = vector.load %arg1[%c256, %c0_28] : memref<1152x128xf32, #tpu.memory_space<vmem>>, vector<128x32xf32>
    %cst_29 = arith.constant dense<0.000000e+00> : vector<8x32xf32>
    %64 = tpu.matmul %62, %63, %cst_29 {dimension_numbers = #tpu.dot_dimension_numbers<[1], [0], [0], [1], [0, 0, 1, 1], [], []>} : vector<8x128xf32>, vector<128x32xf32>, vector<8x32xf32> -> vector<8x32xf32>
    %65 = arith.addf %61, %64 : vector<8x32xf32>
    %c120 = arith.constant 120 : index
    %c0_30 = arith.constant 0 : index
    %66 = vector.load %arg0[%c120, %c0_30] : memref<152x128xf32, #tpu.memory_space<vmem>>, vector<8x128xf32>
    %c384 = arith.constant 384 : index
    %c0_31 = arith.constant 0 : index
    %67 = vector.load %arg1[%c384, %c0_31] : memref<1152x128xf32, #tpu.memory_space<vmem>>, vector<128x32xf32>
    %cst_32 = arith.constant dense<0.000000e+00> : vector<8x32xf32>
    %68 = tpu.matmul %66, %67, %cst_32 {dimension_numbers = #tpu.dot_dimension_numbers<[1], [0], [0], [1], [0, 0, 1, 1], [], []>} : vector<8x128xf32>, vector<128x32xf32>, vector<8x32xf32> -> vector<8x32xf32>
    %69 = arith.addf %65, %68 : vector<8x32xf32>
    %c128_33 = arith.constant 128 : index
    %c0_34 = arith.constant 0 : index
    %70 = vector.load %arg0[%c128_33, %c0_34] : memref<152x128xf32, #tpu.memory_space<vmem>>, vector<8x128xf32>
    %c512 = arith.constant 512 : index
    %c0_35 = arith.constant 0 : index
    %71 = vector.load %arg1[%c512, %c0_35] : memref<1152x128xf32, #tpu.memory_space<vmem>>, vector<128x32xf32>
    %cst_36 = arith.constant dense<0.000000e+00> : vector<8x32xf32>
    %72 = tpu.matmul %70, %71, %cst_36 {dimension_numbers = #tpu.dot_dimension_numbers<[1], [0], [0], [1], [0, 0, 1, 1], [], []>} : vector<8x128xf32>, vector<128x32xf32>, vector<8x32xf32> -> vector<8x32xf32>
    %73 = arith.addf %69, %72 : vector<8x32xf32>
    %c136 = arith.constant 136 : index
    %c0_37 = arith.constant 0 : index
    %74 = vector.load %arg0[%c136, %c0_37] : memref<152x128xf32, #tpu.memory_space<vmem>>, vector<8x128xf32>
    %c640 = arith.constant 640 : index
    %c0_38 = arith.constant 0 : index
    %75 = vector.load %arg1[%c640, %c0_38] : memref<1152x128xf32, #tpu.memory_space<vmem>>, vector<128x32xf32>
    %cst_39 = arith.constant dense<0.000000e+00> : vector<8x32xf32>
    %76 = tpu.matmul %74, %75, %cst_39 {dimension_numbers = #tpu.dot_dimension_numbers<[1], [0], [0], [1], [0, 0, 1, 1], [], []>} : vector<8x128xf32>, vector<128x32xf32>, vector<8x32xf32> -> vector<8x32xf32>
    %77 = arith.addf %73, %76 : vector<8x32xf32>
    %c144 = arith.constant 144 : index
    %c0_40 = arith.constant 0 : index
    %78 = vector.load %arg0[%c144, %c0_40] : memref<152x128xf32, #tpu.memory_space<vmem>>, vector<8x128xf32>
    %c768 = arith.constant 768 : index
    %c0_41 = arith.constant 0 : index
    %79 = vector.load %arg1[%c768, %c0_41] : memref<1152x128xf32, #tpu.memory_space<vmem>>, vector<128x32xf32>
    %cst_42 = arith.constant dense<0.000000e+00> : vector<8x32xf32>
    %80 = tpu.matmul %78, %79, %cst_42 {dimension_numbers = #tpu.dot_dimension_numbers<[1], [0], [0], [1], [0, 0, 1, 1], [], []>} : vector<8x128xf32>, vector<128x32xf32>, vector<8x32xf32> -> vector<8x32xf32>
    %81 = arith.addf %77, %80 : vector<8x32xf32>
    %82 = vector.extract_strided_slice %81 {offsets = [0, 0], sizes = [2, 32], strides = [1, 1]} : vector<8x32xf32> to vector<2x32xf32>
    %83 = vector.broadcast %3 : vector<1x32xf32> to vector<2x32xf32>
    %84 = arith.addf %82, %83 : vector<2x32xf32>
    %cst_43 = arith.constant dense<0.000000e+00> : vector<32xf32>
    %85 = vector.multi_reduction <add>, %84, %cst_43 [0] : vector<2x32xf32> to vector<32xf32>
    %86 = vector.shape_cast %85 : vector<32xf32> to vector<1x32xf32>
    %cst_44 = arith.constant 2.000000e+00 : f32
    %87 = vector.broadcast %cst_44 : f32 to vector<1x32xf32>
    %88 = arith.divf %86, %87 : vector<1x32xf32>
    %89 = vector.broadcast %88 : vector<1x32xf32> to vector<2x32xf32>
    %90 = arith.subf %84, %89 : vector<2x32xf32>
    %91 = arith.mulf %90, %90 : vector<2x32xf32>
    %cst_45 = arith.constant dense<0.000000e+00> : vector<32xf32>
    %92 = vector.multi_reduction <add>, %91, %cst_45 [0] : vector<2x32xf32> to vector<32xf32>
    %93 = vector.shape_cast %92 : vector<32xf32> to vector<1x32xf32>
    %cst_46 = arith.constant 2.000000e+00 : f32
    %94 = vector.broadcast %cst_46 : f32 to vector<1x32xf32>
    %95 = arith.divf %93, %94 : vector<1x32xf32>
    %96 = vector.broadcast %88 : vector<1x32xf32> to vector<2x32xf32>
    %97 = arith.subf %84, %96 : vector<2x32xf32>
    %cst_47 = arith.constant 9.99999974E-6 : f32
    %98 = vector.broadcast %cst_47 : f32 to vector<1x32xf32>
    %99 = arith.addf %95, %98 : vector<1x32xf32>
    %100 = math.rsqrt %99 : vector<1x32xf32>
    %101 = vector.broadcast %100 : vector<1x32xf32> to vector<2x32xf32>
    %102 = arith.mulf %97, %101 : vector<2x32xf32>
    %103 = vector.broadcast %4 : vector<1x32xf32> to vector<2x32xf32>
    %104 = arith.mulf %102, %103 : vector<2x32xf32>
    %105 = vector.broadcast %5 : vector<1x32xf32> to vector<2x32xf32>
    %106 = arith.addf %104, %105 : vector<2x32xf32>
    %cst_48 = arith.constant 0.000000e+00 : f32
    %107 = vector.broadcast %cst_48 : f32 to vector<2x32xf32>
    %108 = arith.maximumf %106, %107 : vector<2x32xf32>
    %c1024 = arith.constant 1024 : index
    %c0_49 = arith.constant 0 : index
    %109 = vector.load %arg1[%c1024, %c0_49] : memref<1152x128xf32, #tpu.memory_space<vmem>>, vector<128x16xf32>
    %110 = vector.extract_strided_slice %54 {offsets = [0, 0], sizes = [2, 32], strides = [1, 1]} : vector<24x32xf32> to vector<2x32xf32>
    %111 = vector.extract_strided_slice %54 {offsets = [2, 0], sizes = [2, 32], strides = [1, 1]} : vector<24x32xf32> to vector<2x32xf32>
    %112 = vector.extract_strided_slice %54 {offsets = [6, 0], sizes = [2, 32], strides = [1, 1]} : vector<24x32xf32> to vector<2x32xf32>
    %113 = vector.extract_strided_slice %54 {offsets = [8, 0], sizes = [2, 32], strides = [1, 1]} : vector<24x32xf32> to vector<2x32xf32>
    %114 = tpu.concatenate %110, %111, %112, %113 in 1 : vector<2x32xf32>, vector<2x32xf32>, vector<2x32xf32>, vector<2x32xf32> -> vector<2x128xf32>
    %115 = vector.extract_strided_slice %54 {offsets = [2, 0], sizes = [2, 32], strides = [1, 1]} : vector<24x32xf32> to vector<2x32xf32>
    %116 = vector.extract_strided_slice %54 {offsets = [4, 0], sizes = [2, 32], strides = [1, 1]} : vector<24x32xf32> to vector<2x32xf32>
    %117 = vector.extract_strided_slice %54 {offsets = [8, 0], sizes = [2, 32], strides = [1, 1]} : vector<24x32xf32> to vector<2x32xf32>
    %118 = vector.extract_strided_slice %54 {offsets = [10, 0], sizes = [2, 32], strides = [1, 1]} : vector<24x32xf32> to vector<2x32xf32>
    %119 = tpu.concatenate %115, %116, %117, %118 in 1 : vector<2x32xf32>, vector<2x32xf32>, vector<2x32xf32>, vector<2x32xf32> -> vector<2x128xf32>
    %120 = vector.extract_strided_slice %54 {offsets = [6, 0], sizes = [2, 32], strides = [1, 1]} : vector<24x32xf32> to vector<2x32xf32>
    %121 = vector.extract_strided_slice %54 {offsets = [8, 0], sizes = [2, 32], strides = [1, 1]} : vector<24x32xf32> to vector<2x32xf32>
    %122 = vector.extract_strided_slice %54 {offsets = [12, 0], sizes = [2, 32], strides = [1, 1]} : vector<24x32xf32> to vector<2x32xf32>
    %123 = vector.extract_strided_slice %54 {offsets = [14, 0], sizes = [2, 32], strides = [1, 1]} : vector<24x32xf32> to vector<2x32xf32>
    %124 = tpu.concatenate %120, %121, %122, %123 in 1 : vector<2x32xf32>, vector<2x32xf32>, vector<2x32xf32>, vector<2x32xf32> -> vector<2x128xf32>
    %125 = vector.extract_strided_slice %54 {offsets = [8, 0], sizes = [2, 32], strides = [1, 1]} : vector<24x32xf32> to vector<2x32xf32>
    %126 = vector.extract_strided_slice %54 {offsets = [10, 0], sizes = [2, 32], strides = [1, 1]} : vector<24x32xf32> to vector<2x32xf32>
    %127 = vector.extract_strided_slice %54 {offsets = [14, 0], sizes = [2, 32], strides = [1, 1]} : vector<24x32xf32> to vector<2x32xf32>
    %128 = vector.extract_strided_slice %54 {offsets = [16, 0], sizes = [2, 32], strides = [1, 1]} : vector<24x32xf32> to vector<2x32xf32>
    %129 = tpu.concatenate %125, %126, %127, %128 in 1 : vector<2x32xf32>, vector<2x32xf32>, vector<2x32xf32>, vector<2x32xf32> -> vector<2x128xf32>
    %130 = tpu.concatenate %114, %119, %124, %129 in 0 : vector<2x128xf32>, vector<2x128xf32>, vector<2x128xf32>, vector<2x128xf32> -> vector<8x128xf32>
    %cst_50 = arith.constant dense<0.000000e+00> : vector<8x16xf32>
    %131 = tpu.matmul %130, %109, %cst_50 {dimension_numbers = #tpu.dot_dimension_numbers<[1], [0], [0], [1], [0, 0, 1, 1], [], []>} : vector<8x128xf32>, vector<128x16xf32>, vector<8x16xf32> -> vector<8x16xf32>
    %132 = vector.extract_strided_slice %131 {offsets = [0, 0], sizes = [2, 16], strides = [1, 1]} : vector<8x16xf32> to vector<2x16xf32>
    %133 = vector.extract_strided_slice %131 {offsets = [2, 0], sizes = [2, 16], strides = [1, 1]} : vector<8x16xf32> to vector<2x16xf32>
    %134 = arith.maximumf %132, %133 : vector<2x16xf32>
    %135 = vector.extract_strided_slice %131 {offsets = [4, 0], sizes = [2, 16], strides = [1, 1]} : vector<8x16xf32> to vector<2x16xf32>
    %136 = vector.extract_strided_slice %131 {offsets = [6, 0], sizes = [2, 16], strides = [1, 1]} : vector<8x16xf32> to vector<2x16xf32>
    %137 = arith.maximumf %135, %136 : vector<2x16xf32>
    %138 = arith.maximumf %134, %137 : vector<2x16xf32>
    %139 = vector.broadcast %6 : vector<1x16xf32> to vector<2x16xf32>
    %140 = arith.addf %138, %139 : vector<2x16xf32>
    %cst_51 = arith.constant dense<0.000000e+00> : vector<16xf32>
    %141 = vector.multi_reduction <add>, %140, %cst_51 [0] : vector<2x16xf32> to vector<16xf32>
    %142 = vector.shape_cast %141 : vector<16xf32> to vector<1x16xf32>
    %cst_52 = arith.constant 2.000000e+00 : f32
    %143 = vector.broadcast %cst_52 : f32 to vector<1x16xf32>
    %144 = arith.divf %142, %143 : vector<1x16xf32>
    %145 = vector.broadcast %144 : vector<1x16xf32> to vector<2x16xf32>
    %146 = arith.subf %140, %145 : vector<2x16xf32>
    %147 = arith.mulf %146, %146 : vector<2x16xf32>
    %cst_53 = arith.constant dense<0.000000e+00> : vector<16xf32>
    %148 = vector.multi_reduction <add>, %147, %cst_53 [0] : vector<2x16xf32> to vector<16xf32>
    %149 = vector.shape_cast %148 : vector<16xf32> to vector<1x16xf32>
    %cst_54 = arith.constant 2.000000e+00 : f32
    %150 = vector.broadcast %cst_54 : f32 to vector<1x16xf32>
    %151 = arith.divf %149, %150 : vector<1x16xf32>
    %152 = vector.broadcast %144 : vector<1x16xf32> to vector<2x16xf32>
    %153 = arith.subf %140, %152 : vector<2x16xf32>
    %cst_55 = arith.constant 9.99999974E-6 : f32
    %154 = vector.broadcast %cst_55 : f32 to vector<1x16xf32>
    %155 = arith.addf %151, %154 : vector<1x16xf32>
    %156 = math.rsqrt %155 : vector<1x16xf32>
    %157 = vector.broadcast %156 : vector<1x16xf32> to vector<2x16xf32>
    %158 = arith.mulf %153, %157 : vector<2x16xf32>
    %159 = vector.broadcast %7 : vector<1x16xf32> to vector<2x16xf32>
    %160 = arith.mulf %158, %159 : vector<2x16xf32>
    %161 = vector.broadcast %8 : vector<1x16xf32> to vector<2x16xf32>
    %162 = arith.addf %160, %161 : vector<2x16xf32>
    %cst_56 = arith.constant 0.000000e+00 : f32
    %163 = vector.broadcast %cst_56 : f32 to vector<2x16xf32>
    %164 = arith.maximumf %162, %163 : vector<2x16xf32>
    %165 = vector.broadcast %9 : vector<1x32xf32> to vector<2x32xf32>
    %166 = arith.mulf %108, %165 : vector<2x32xf32>
    %cst_57 = arith.constant dense<0.000000e+00> : vector<2xf32>
    %167 = vector.multi_reduction <add>, %166, %cst_57 [1] : vector<2x32xf32> to vector<2xf32>
    %168 = vector.shape_cast %167 : vector<2xf32> to vector<2x1xf32>
    %169 = vector.broadcast %10 : vector<1x16xf32> to vector<2x16xf32>
    %170 = arith.mulf %164, %169 : vector<2x16xf32>
    %cst_58 = arith.constant dense<0.000000e+00> : vector<2xf32>
    %171 = vector.multi_reduction <add>, %170, %cst_58 [1] : vector<2x16xf32> to vector<2xf32>
    %172 = vector.shape_cast %171 : vector<2xf32> to vector<2x1xf32>
    %173 = arith.addf %168, %172 : vector<2x1xf32>
    %174 = vector.broadcast %11 : vector<1x1xf32> to vector<2x1xf32>
    %175 = arith.addf %173, %174 : vector<2x1xf32>
    %cst_59 = arith.constant 0.000000e+00 : f32
    %176 = vector.broadcast %cst_59 : f32 to vector<2x1xf32>
    %177 = arith.subf %176, %175 : vector<2x1xf32>
    %cst_60 = arith.constant 0.00999999977 : f32
    %178 = vector.broadcast %cst_60 : f32 to vector<2x1xf32>
    %179 = arith.mulf %177, %178 : vector<2x1xf32>
    %180 = math.exp %179 : vector<2x1xf32>
    %cst_61 = arith.constant 1.000000e+00 : f32
    %181 = vector.broadcast %cst_61 : f32 to vector<2x1xf32>
    %182 = arith.addf %181, %180 : vector<2x1xf32>
    %183 = tpu.reciprocal %182 {approx = true} : vector<2x1xf32> -> vector<2x1xf32>
    %184 = vector.shape_cast %183 : vector<2x1xf32> to vector<2x1xf32>
    %185 = vector.broadcast %184 : vector<2x1xf32> to vector<2x128xf32>
    %cst_62 = arith.constant 0.000000e+00 : f32
    %186 = vector.broadcast %cst_62 : f32 to vector<6x128xf32>
    %187 = tpu.concatenate %185, %186 in 0 : vector<2x128xf32>, vector<6x128xf32> -> vector<8x128xf32>
    %c0_63 = arith.constant 0 : index
    %c0_64 = arith.constant 0 : index
    %188 = vector.load %arg2[%c0_63, %c0_64] : memref<8x128xf32, #tpu.memory_space<vmem>>, vector<8x128xf32>
    tpu.vector_store %arg2[%c0_63, %c0_64], %187 {strides = array<i32>} : memref<8x128xf32, #tpu.memory_space<vmem>>, vector<8x128xf32>,
    return
  }
}

</mosaic_0001>

<bundles_post_ra>
// kernel: custom_net_forward.1
= control target key start
LH: loop header
LB: loop body
LE: loop exit
PB: predicated region body
PF: predicated region fallthrough
CT: control target
= control target key end

     0   :  { %v1721_v2 = vmov 0.0   ;;  %vm1722_vm0 = vmmov 0   ;;  %s1723_s29 = smov 64   ;;  %vm212_vm2 = vcmask 261120   ;;  %s1725_s18 = smov 96   ;;  %vm971_vm3 = vcmask 523264   ;;  %s2462_s1 = inlined_call_operand.vmem [shape: f32[1152,128], index: 1, kind: input, shape index: {}]   ;;  %s2463_s0 = inlined_call_operand.vmem [shape: f32[152,128], index: 0, kind: input, shape index: {}]   ;;  %s2464_s2 = inlined_call_operand.vmem [shape: f32[8,128], index: 2, kind: output, shape index: {}]  }
   0x1   :  { %v38_v0 = vld [vmem:[%s2462_s1 + $0x3f8] sm:$0xff]  ;;  %v37_v1 = vld [vmem:[%s2462_s1 + $0x3f0] sm:$0xff]  ;;  %1409 = vmatprep.subr.mxu1 %v1721_v2  ;;  %1441 = vmatprep.mubr.msk.f32.mxu1 %vm1722_vm0, %v1721_v2  ;;  %v36_v3 = vld [vmem:[%s2462_s1 + $0x3e8] sm:$0xff]  ;;  %vm973_vm4 = vcmask 785408   ;;  %vm1001_vm5 = vcmask 1041408   ;;  %vm1003_vm6 = vcmask 1043456  }
   0x2   :  { %1359 = vmatprep.subr.mxu0 %v38_v0  ;;  %v35_v4 = vld [vmem:[%s2462_s1 + $0x3e0] sm:$0xff]  ;;  %v34_v6 = vld [vmem:[%s2462_s1 + $0x3d8] sm:$0xff]  ;;  %v33_v7 = vld [vmem:[%s2462_s1 + $0x3d0] sm:$0xff]  ;;  %vm1005_vm7 = vcmask 1045504   ;;  %vm899_vm8 = vcmask 254976   ;;  %vm1094_vm9 = vcmask 123904  }
   0x3   :  { %1360 = vmatpush3.msra.mxu0 %v38_v0  ;;  %v39_v5 = vld [vmem:[%s2463_s0] sm:$0xff]  ;;  %v309_v9 = vld [vmem:[%s2462_s1 + $0xf8] sm:$0xff]  ;;  %v32_v10 = vld [vmem:[%s2462_s1 + $0x3c8] sm:$0xff] }
   0x4   :  { %1361 = vmatprep.subr.mxu0 %v37_v1  ;;  %1391 = vmatprep.mubr.f32.mxu0 %v39_v5  ;;  %v1182_v8 = vld [vmem:[%s2462_s1] ss:$0 sm:$0xff]  ;;  %v308_v11 = vld [vmem:[%s2462_s1 + $0xf0] sm:$0xff]  ;;  %v307_v13 = vld [vmem:[%s2462_s1 + $0xe8] sm:$0xff] }
   0x5   :  { %1362 = vmatpush3.msra.mxu0 %v37_v1  ;;  %190 = vrot.lane.b32.xlu0 %v1182_v8, %s1723_s29  ;;  %v31_v12 = vld [vmem:[%s2462_s1 + $0x3c0] sm:$0xff]  ;;  %v30_v14 = vld [vmem:[%s2462_s1 + $0x3b8] sm:$0xff]  ;;  %v29_v16 = vld [vmem:[%s2462_s1 + $0x3b0] sm:$0xff] }
   0x6   :  { %1363 = vmatprep.subr.mxu0 %v36_v3  ;;  %1410 = vmatpush3.msra.mxu1 %v309_v9  ;;  %v306_v15 = vld [vmem:[%s2462_s1 + $0xe0] sm:$0xff]  ;;  %v305_v17 = vld [vmem:[%s2462_s1 + $0xd8] sm:$0xff]  ;;  %v28_v18 = vld [vmem:[%s2462_s1 + $0x3a8] sm:$0xff] }
   0x7   :  { %1364 = vmatpush3.msra.mxu0 %v36_v3  ;;  %1411 = vmatprep.subr.mxu1 %v1721_v2  ;;  %v1184_v19 = vld [vmem:[%s2462_s1 + $0x1] ss:$0 sm:$0xff]  ;;  %v304_v20 = vld [vmem:[%s2462_s1 + $0xd0] sm:$0xff]  ;;  %v1185_v22 = vld [vmem:[%s2462_s1 + $0x2] ss:$0 sm:$0xff] }
   0x8   :  { %1365 = vmatprep.subr.mxu0 %v35_v4  ;;  %1412 = vmatpush3.msra.mxu1 %v308_v11  ;;  %v27_v21 = vld [vmem:[%s2462_s1 + $0x3a0] sm:$0xff]  ;;  %v26_v23 = vld [vmem:[%s2462_s1 + $0x398] sm:$0xff]  ;;  %v303_v24 = vld [vmem:[%s2462_s1 + $0xc8] sm:$0xff] }
   0x9   :  { %1366 = vmatpush3.msra.mxu0 %v35_v4  ;;  %1413 = vmatprep.subr.mxu1 %v1721_v2  ;;  %v25_v25 = vld [vmem:[%s2462_s1 + $0x390] sm:$0xff]  ;;  %v302_v26 = vld [vmem:[%s2462_s1 + $0xc0] sm:$0xff]  ;;  %v24_v27 = vld [vmem:[%s2462_s1 + $0x388] sm:$0xff] }
   0xa   :  { %1367 = vmatprep.subr.mxu0 %v34_v6  ;;  %1414 = vmatpush3.msra.mxu1 %v307_v13  ;;  %v301_v28 = vld [vmem:[%s2462_s1 + $0xb8] sm:$0xff]  ;;  %v23_v29 = vld [vmem:[%s2462_s1 + $0x380] sm:$0xff]  ;;  %v300_v30 = vld [vmem:[%s2462_s1 + $0xb0] sm:$0xff] }
   0xb   :  { %1368 = vmatpush3.msra.mxu0 %v34_v6  ;;  %1415 = vmatprep.subr.mxu1 %v1721_v2  ;;  %v40_v31 = vld [vmem:[%s2463_s0 + $0x8] sm:$0xff]  ;;  %v41_v33 = vld [vmem:[%s2463_s0 + $0x10] sm:$0xff]  ;;  %v298_v34 = vld [vmem:[%s2462_s1 + $0xa0] sm:$0xff] }
   0xc   :  { %1369 = vmatprep.subr.mxu0 %v33_v7  ;;  %1416 = vmatpush3.msra.mxu1 %v306_v15  ;;  %v299_v32 = vld [vmem:[%s2462_s1 + $0xa8] sm:$0xff]  ;;  %v292_v35 = vld [vmem:[%s2462_s1 + $0x78] sm:$0xff]  ;;  %v43_v38 = vld [vmem:[%s2463_s0 + $0x20] sm:$0xff] }
   0xd   :  { %1370 = vmatpush3.msra.mxu0 %v33_v7  ;;  %1417 = vmatprep.subr.mxu1 %v1721_v2  ;;  %v42_v36 = vld [vmem:[%s2463_s0 + $0x18] sm:$0xff]  ;;  %v296_v39 = vld [vmem:[%s2462_s1 + $0x90] sm:$0xff]  ;;  %v44_v41 = vld [vmem:[%s2463_s0 + $0x28] sm:$0xff] }
   0xe   :  { %1371 = vmatprep.subr.mxu0 %v32_v10  ;;  %1418 = vmatpush3.msra.mxu1 %v305_v17  ;;  %v297_v37 = vld [vmem:[%s2462_s1 + $0x98] sm:$0xff]  ;;  %v291_v40 = vld [vmem:[%s2462_s1 + $0x70] sm:$0xff]  ;;  %v295_v42 = vld [vmem:[%s2462_s1 + $0x88] sm:$0xff] }
   0xf   :  { %1372 = vmatpush3.msra.mxu0 %v32_v10  ;;  %1419 = vmatprep.subr.mxu1 %v1721_v2  ;;  %v45_v43 = vld [vmem:[%s2463_s0 + $0x30] sm:$0xff]  ;;  %v294_v44 = vld [vmem:[%s2462_s1 + $0x80] sm:$0xff]  ;;  %v293_v45 = vld [vmem:[%s2463_s0 + $0x68] sm:$0xff] }
  0x10   :  { %1373 = vmatprep.subr.mxu0 %v31_v12  ;;  %256 = vrot.lane.b32.xlu0 %v1184_v19, %s1723_s29  ;;  %v46_v46 = vld [vmem:[%s2463_s0 + $0x38] sm:$0xff]  ;;  %v47_v48 = vld [vmem:[%s2463_s0 + $0x40] sm:$0xff]  ;;  %v290_v49 = vld [vmem:[%s2462_s1 + $0x68] sm:$0xff] }
  0x11   :  { %1374 = vmatpush3.msra.mxu0 %v31_v12  ;;  %1420 = vmatpush3.msra.mxu1 %v304_v20  ;;  %v466_v47 = vld [vmem:[%s2462_s1 + $0x178] sm:$0xff]  ;;  %v465_v50 = vld [vmem:[%s2462_s1 + $0x170] sm:$0xff]  ;;  %v48_v51 = vld [vmem:[%s2463_s0 + $0x48] sm:$0xff] }
  0x12   :  { %1375 = vmatprep.subr.mxu0 %v30_v14  ;;  %1421 = vmatprep.subr.mxu1 %v1721_v2  ;;  %v49_v52 = vld [vmem:[%s2463_s0 + $0x50] sm:$0xff]  ;;  %v50_v53 = vld [vmem:[%s2463_s0 + $0x58] sm:$0xff]  ;;  %v289_v54 = vld [vmem:[%s2462_s1 + $0x60] sm:$0xff] }
  0x13   :  { %1376 = vmatpush3.msra.mxu0 %v30_v14  ;;  %267 = vrot.lane.b32.xlu1 %v1185_v22, %s1723_s29  ;;  %v464_v55 = vld [vmem:[%s2462_s1 + $0x168] sm:$0xff]  ;;  %v288_v56 = vld [vmem:[%s2462_s1 + $0x58] sm:$0xff]  ;;  %v463_v57 = vld [vmem:[%s2462_s1 + $0x160] sm:$0xff] }
  0x14   :  { %1377 = vmatprep.subr.mxu0 %v29_v16  ;;  %1422 = vmatpush3.msra.mxu1 %v303_v24  ;;  %v287_v58 = vld [vmem:[%s2462_s1 + $0x50] sm:$0xff]  ;;  %v462_v59 = vld [vmem:[%s2462_s1 + $0x158] sm:$0xff]  ;;  %v286_v60 = vld [vmem:[%s2462_s1 + $0x48] sm:$0xff] }
  0x15   :  { %1378 = vmatpush3.msra.mxu0 %v29_v16  ;;  %1423 = vmatprep.subr.mxu1 %v1721_v2  ;;  %v461_v61 = vld [vmem:[%s2462_s1 + $0x150] sm:$0xff]  ;;  %v285_v62 = vld [vmem:[%s2462_s1 + $0x40] sm:$0xff]  ;;  %v460_v63 = vld [vmem:[%s2462_s1 + $0x148] sm:$0xff] }
  0x16   :  { %1379 = vmatprep.subr.mxu0 %v28_v18  ;;  %1424 = vmatpush3.msra.mxu1 %v302_v26  ;;  %v284_v0 = vld [vmem:[%s2462_s1 + $0x38] sm:$0xff]  ;;  %v459_v1 = vld [vmem:[%s2462_s1 + $0x140] sm:$0xff]  ;;  %v283_v3 = vld [vmem:[%s2462_s1 + $0x30] sm:$0xff] }
  0x17   :  { %1380 = vmatpush3.msra.mxu0 %v28_v18  ;;  %1425 = vmatprep.subr.mxu1 %v1721_v2  ;;  %v458_v4 = vld [vmem:[%s2462_s1 + $0x138] sm:$0xff]  ;;  %v282_v5 = vld [vmem:[%s2462_s1 + $0x28] sm:$0xff]  ;;  %v457_v6 = vld [vmem:[%s2462_s1 + $0x130] sm:$0xff] }
  0x18   :  { %1381 = vmatprep.subr.mxu0 %v27_v21  ;;  %1426 = vmatpush3.msra.mxu1 %v301_v28  ;;  %v281_v7 = vld [vmem:[%s2462_s1 + $0x20] sm:$0xff]  ;;  %v456_v8 = vld [vmem:[%s2462_s1 + $0x128] sm:$0xff]  ;;  %v280_v9 = vld [vmem:[%s2462_s1 + $0x18] sm:$0xff] }
  0x19   :  { %1382 = vmatpush3.msra.mxu0 %v27_v21  ;;  %1427 = vmatprep.subr.mxu1 %v1721_v2  ;;  %v455_v10 = vld [vmem:[%s2462_s1 + $0x120] sm:$0xff]  ;;  %v279_v11 = vld [vmem:[%s2462_s1 + $0x10] sm:$0xff]  ;;  %v454_v12 = vld [vmem:[%s2462_s1 + $0x118] sm:$0xff] }
  0x1a   :  { %1383 = vmatprep.subr.mxu0 %v26_v23  ;;  %1428 = vmatpush3.msra.mxu1 %v300_v30  ;;  %v278_v13 = vld [vmem:[%s2462_s1 + $0x8] sm:$0xff]  ;;  %v453_v14 = vld [vmem:[%s2462_s1 + $0x110] sm:$0xff]  ;;  %v277_v15 = vld [vmem:[%s2462_s1] sm:$0xff] }
  0x1b   :  { %1384 = vmatpush3.msra.mxu0 %v26_v23  ;;  %1429 = vmatprep.subr.mxu1 %v1721_v2  ;;  %v452_v16 = vld [vmem:[%s2462_s1 + $0x108] sm:$0xff]  ;;  %v276_v17 = vld [vmem:[%s2463_s0 + $0x60] sm:$0xff]  ;;  %v554_v19 = vld [vmem:[%s2462_s1 + $0x1f8] sm:$0xff] }
  0x1c   :  { %1385 = vmatprep.subr.mxu0 %v25_v25  ;;  %1430 = vmatpush3.msra.mxu1 %v299_v32  ;;  %v451_v18 = vld [vmem:[%s2462_s1 + $0x100] sm:$0xff]  ;;  %v450_v20 = vld [vmem:[%s2463_s0 + $0x70] sm:$0xff]  ;;  %v642_v22 = vld [vmem:[%s2462_s1 + $0x278] sm:$0xff] }
  0x1d   :  { %1386 = vmatpush3.msra.mxu0 %v25_v25  ;;  %1431 = vmatprep.subr.mxu1 %v1721_v2  ;;  %v553_v21 = vld [vmem:[%s2462_s1 + $0x1f0] sm:$0xff]  ;;  %v552_v23 = vld [vmem:[%s2462_s1 + $0x1e8] sm:$0xff]  ;;  %v551_v25 = vld [vmem:[%s2462_s1 + $0x1e0] sm:$0xff] }
  0x1e   :  { %1387 = vmatprep.subr.mxu0 %v24_v27  ;;  %1432 = vmatpush3.msra.mxu1 %v298_v34  ;;  %v641_v24 = vld [vmem:[%s2462_s1 + $0x270] sm:$0xff]  ;;  %v640_v26 = vld [vmem:[%s2462_s1 + $0x268] sm:$0xff]  ;;  %v639_v28 = vld [vmem:[%s2462_s1 + $0x260] sm:$0xff] }
  0x1f   :  { %1388 = vmatpush3.msra.mxu0 %v24_v27  ;;  %1433 = vmatprep.subr.mxu1 %v1721_v2  ;;  %v550_v27 = vld [vmem:[%s2462_s1 + $0x1d8] sm:$0xff]  ;;  %v637_v32 = vld [vmem:[%s2462_s1 + $0x250] sm:$0xff]  ;;  %v636_v34 = vld [vmem:[%s2462_s1 + $0x248] sm:$0xff] }
  0x20   :  { %1389 = vmatprep.subr.mxu0 %v23_v29  ;;  %1434 = vmatpush3.msra.mxu1 %v297_v37  ;;  %v638_v30 = vld [vmem:[%s2462_s1 + $0x258] sm:$0xff]  ;;  %v545_v37 = vld [vmem:[%s2462_s1 + $0x1b0] sm:$0xff] }
  0x21   :  { %1390 = vmatpush3.msra.mxu0 %v23_v29  ;;  %1435 = vmatprep.subr.mxu1 %v1721_v2  ;;  %v549_v29 = vld [vmem:[%s2462_s1 + $0x1d0] sm:$0xff] }
  0x22   :  { %1392 = vmatmul.mubr.f32.vlgmr.msra.gmra.mxu0 %v40_v31  ;;  %1444 = vmatprep.subr.mxu0 %v1721_v2  ;;  %v548_v31 = vld [vmem:[%s2462_s1 + $0x1c8] sm:$0xff] }
  0x23   :  { %1394 = vmatprep.mubr.f32.mxu0 %v41_v33  ;;  %1445 = vmatpush3.msra.mxu0 %v292_v35  ;;  %v547_v33 = vld [vmem:[%s2462_s1 + $0x1c0] sm:$0xff]  ;;  %v546_v35 = vld [vmem:[%s2462_s1 + $0x1b8] sm:$0xff] }
  0x24   :  { %1436 = vmatpush3.msra.mxu1 %v296_v39  ;;  %1446 = vmatprep.subr.mxu0 %v1721_v2  ;;  %v544_v39 = vld [vmem:[%s2462_s1 + $0x1a8] sm:$0xff] }
  0x25   :  { %1437 = vmatprep.subr.mxu1 %v1721_v2  ;;  %1447 = vmatpush3.msra.mxu0 %v291_v40  ;;  %v633_v40 = vld [vmem:[%s2462_s1 + $0x230] sm:$0xff] }
  0x26   :  { %1395 = vmatmul.mubr.f32.gmra.mxu0 %v42_v36  ;;  %1438 = vmatpush3.msra.mxu1 %v295_v42  ;;  %v635_v36 = vld [vmem:[%s2462_s1 + $0x240] sm:$0xff]  ;;  %v632_v42 = vld [vmem:[%s2462_s1 + $0x228] sm:$0xff] }
  0x27   :  { %1397 = vmatprep.mubr.f32.mxu0 %v43_v38  ;;  %1439 = vmatprep.subr.mxu1 %v1721_v2  ;;  %v634_v38 = vld [vmem:[%s2462_s1 + $0x238] sm:$0xff] }
  0x28   :  { %1440 = vmatpush3.msra.mxu1 %v294_v44  ;;  %1448 = vmatprep.subr.mxu0 %v1721_v2  ;;  %v631_v44 = vld [vmem:[%s2462_s1 + $0x220] sm:$0xff] }
  0x29   :  { %1479 = vmatprep.subr.mxu1 %v1721_v2  ;;  %1442 = vmatmul.mubr.f32.vlgmr.msra.gmra.mxu1 %v293_v45  ;;  %v541_v45 = vld [vmem:[%s2462_s1 + $0x190] sm:$0xff] }
  0x2a   :  { %1398 = vmatmul.mubr.f32.gmra.mxu0 %v44_v41  ;;  %1480 = vmatpush3.msra.mxu1 %v466_v47  ;;  %v543_v41 = vld [vmem:[%s2462_s1 + $0x1a0] sm:$0xff]  ;;  %v540_v47 = vld [vmem:[%s2462_s1 + $0x188] sm:$0xff] }
  0x2b   :  { %1400 = vmatprep.mubr.f32.mxu0 %v45_v43  ;;  %1481 = vmatprep.subr.mxu1 %v1721_v2  ;;  %v542_v43 = vld [vmem:[%s2462_s1 + $0x198] sm:$0xff] }
  0x2c   :  { %1449 = vmatpush3.msra.mxu0 %v290_v49  ;;  %1482 = vmatpush3.msra.mxu1 %v465_v50  ;;  %v539_v49 = vld [vmem:[%s2462_s1 + $0x180] sm:$0xff]  ;;  %v628_v50 = vld [vmem:[%s2462_s1 + $0x208] sm:$0xff] }
  0x2d   :  { %1450 = vmatprep.subr.mxu0 %v1721_v2  ;;  %1483 = vmatprep.subr.mxu1 %v1721_v2 }
  0x2e   :  { %1401 = vmatmul.mubr.f32.gmra.mxu0 %v46_v46  ;;  %1511 = vmatprep.mubr.msk.f32.mxu1 %vm1722_vm0, %v1721_v2  ;;  %v630_v46 = vld [vmem:[%s2462_s1 + $0x218] sm:$0xff] }
  0x2f   :  { %1403 = vmatprep.mubr.f32.mxu0 %v47_v48  ;;  %1451 = vmatpush3.msra.mxu0 %v289_v54  ;;  %v629_v48 = vld [vmem:[%s2462_s1 + $0x210] sm:$0xff]  ;;  %v626_v54 = vld [vmem:[%s2463_s0 + $0x80] sm:$0xff] }
  0x30   :  { %1484 = vmatpush3.msra.mxu1 %v464_v55  ;;  %1452 = vmatprep.subr.mxu0 %v1721_v2  ;;  %v729_v55 = vld [vmem:[%s2462_s1 + $0x2f0] sm:$0xff] }
  0x31   :  { %1485 = vmatprep.subr.mxu1 %v1721_v2  ;;  %1453 = vmatpush3.msra.mxu0 %v288_v56  ;;  %v818_v56 = vld [vmem:[%s2462_s1 + $0x378] sm:$0xff] }
  0x32   :  { %1404 = vmatmul.mubr.f32.gmra.mxu0 %v48_v51  ;;  %1486 = vmatpush3.msra.mxu1 %v463_v57  ;;  %v538_v51 = vld [vmem:[%s2463_s0 + $0x78] sm:$0xff]  ;;  %v728_v57 = vld [vmem:[%s2462_s1 + $0x2e8] sm:$0xff] }
  0x33   :  { %1406 = vmatprep.mubr.f32.mxu0 %v49_v52  ;;  %1454 = vmatprep.subr.mxu0 %v1721_v2  ;;  %v627_v52 = vld [vmem:[%s2462_s1 + $0x200] sm:$0xff] }
  0x34   :  { %1487 = vmatprep.subr.mxu1 %v1721_v2  ;;  %1455 = vmatpush3.msra.mxu0 %v287_v58  ;;  %v817_v58 = vld [vmem:[%s2462_s1 + $0x370] sm:$0xff] }
  0x35   :  { %1488 = vmatpush3.msra.mxu1 %v462_v59  ;;  %1456 = vmatprep.subr.mxu0 %v1721_v2  ;;  %v727_v59 = vld [vmem:[%s2462_s1 + $0x2e0] sm:$0xff] }
  0x36   :  { %1407 = vmatmul.mubr.f32.gmra.mxu0 %v50_v53  ;;  %1489 = vmatprep.subr.mxu1 %v1721_v2  ;;  %v730_v53 = vld [vmem:[%s2462_s1 + $0x2f8] sm:$0xff] }
  0x37   :  { %1476 = vmatprep.mubr.msk.f32.mxu0 %vm1722_vm0, %v1721_v2  ;;  %1457 = vmatpush3.msra.mxu0 %v286_v60  ;;  %v816_v60 = vld [vmem:[%s2462_s1 + $0x368] sm:$0xff] }
  0x38   :  { %1490 = vmatpush3.msra.mxu1 %v461_v61  ;;  %1458 = vmatprep.subr.mxu0 %v1721_v2  ;;  %v726_v61 = vld [vmem:[%s2462_s1 + $0x2d8] sm:$0xff] }
  0x39   :  { %1491 = vmatprep.subr.mxu1 %v1721_v2  ;;  %1459 = vmatpush3.msra.mxu0 %v285_v62  ;;  %v815_v62 = vld [vmem:[%s2462_s1 + $0x360] sm:$0xff] }
  0x3a   :  { %1492 = vmatpush3.msra.mxu1 %v460_v63  ;;  %1460 = vmatprep.subr.mxu0 %v1721_v2  ;;  %v725_v63 = vld [vmem:[%s2462_s1 + $0x2d0] sm:$0xff] }
  0x3b   :  { %1493 = vmatprep.subr.mxu1 %v1721_v2  ;;  %1461 = vmatpush3.msra.mxu0 %v284_v0  ;;  %v814_v0 = vld [vmem:[%s2462_s1 + $0x358] sm:$0xff] }
  0x3c   :  { %1494 = vmatpush3.msra.mxu1 %v459_v1  ;;  %1462 = vmatprep.subr.mxu0 %v1721_v2  ;;  %v724_v1 = vld [vmem:[%s2462_s1 + $0x2c8] sm:$0xff] }
  0x3d   :  { %1495 = vmatprep.subr.mxu1 %v1721_v2  ;;  %1463 = vmatpush3.msra.mxu0 %v283_v3  ;;  %v813_v3 = vld [vmem:[%s2462_s1 + $0x350] sm:$0xff] }
  0x3e   :  { %1496 = vmatpush3.msra.mxu1 %v458_v4  ;;  %1464 = vmatprep.subr.mxu0 %v1721_v2  ;;  %v723_v4 = vld [vmem:[%s2462_s1 + $0x2c0] sm:$0xff] }
  0x3f   :  { %1497 = vmatprep.subr.mxu1 %v1721_v2  ;;  %1465 = vmatpush3.msra.mxu0 %v282_v5  ;;  %v812_v5 = vld [vmem:[%s2462_s1 + $0x348] sm:$0xff] }
  0x40   :  { %1498 = vmatpush3.msra.mxu1 %v457_v6  ;;  %1466 = vmatprep.subr.mxu0 %v1721_v2  ;;  %v722_v6 = vld [vmem:[%s2462_s1 + $0x2b8] sm:$0xff] }
  0x41   :  { %1499 = vmatprep.subr.mxu1 %v1721_v2  ;;  %1467 = vmatpush3.msra.mxu0 %v281_v7  ;;  %v811_v7 = vld [vmem:[%s2462_s1 + $0x340] sm:$0xff] }
  0x42   :  { %1500 = vmatpush3.msra.mxu1 %v456_v8  ;;  %1468 = vmatprep.subr.mxu0 %v1721_v2  ;;  %v721_v8 = vld [vmem:[%s2462_s1 + $0x2b0] sm:$0xff] }
  0x43   :  { %1501 = vmatprep.subr.mxu1 %v1721_v2  ;;  %1469 = vmatpush3.msra.mxu0 %v280_v9  ;;  %v810_v9 = vld [vmem:[%s2462_s1 + $0x338] sm:$0xff] }
  0x44   :  { %1502 = vmatpush3.msra.mxu1 %v455_v10  ;;  %1470 = vmatprep.subr.mxu0 %v1721_v2  ;;  %v720_v10 = vld [vmem:[%s2462_s1 + $0x2a8] sm:$0xff] }
  0x45   :  { %1503 = vmatprep.subr.mxu1 %v1721_v2  ;;  %1471 = vmatpush3.msra.mxu0 %v279_v11  ;;  %v809_v11 = vld [vmem:[%s2462_s1 + $0x330] sm:$0xff] }
  0x46   :  { %1504 = vmatpush3.msra.mxu1 %v454_v12  ;;  %1472 = vmatprep.subr.mxu0 %v1721_v2  ;;  %v719_v12 = vld [vmem:[%s2462_s1 + $0x2a0] sm:$0xff] }
  0x47   :  { %1505 = vmatprep.subr.mxu1 %v1721_v2  ;;  %1473 = vmatpush3.msra.mxu0 %v278_v13  ;;  %v808_v13 = vld [vmem:[%s2462_s1 + $0x328] sm:$0xff] }
  0x48   :  { %1506 = vmatpush3.msra.mxu1 %v453_v14  ;;  %1474 = vmatprep.subr.mxu0 %v1721_v2  ;;  %v718_v14 = vld [vmem:[%s2462_s1 + $0x298] sm:$0xff] }
  0x49   :  { %1507 = vmatprep.subr.mxu1 %v1721_v2  ;;  %1475 = vmatpush3.msra.mxu0 %v277_v15  ;;  %v807_v15 = vld [vmem:[%s2462_s1 + $0x320] sm:$0xff] }
  0x4a   :  { %1508 = vmatpush3.msra.mxu1 %v452_v16  ;;  %1514 = vmatprep.subr.mxu0 %v1721_v2  ;;  %v717_v16 = vld [vmem:[%s2462_s1 + $0x290] sm:$0xff] }
  0x4b   :  { %1509 = vmatprep.subr.mxu1 %v1721_v2  ;;  %1477 = vmatmul.mubr.f32.vlgmr.msra.gmra.mxu0 %v276_v17  ;;  %v806_v17 = vld [vmem:[%s2462_s1 + $0x318] sm:$0xff] }
  0x4c   :  { %1510 = vmatpush3.msra.mxu1 %v451_v18  ;;  %1515 = vmatpush3.msra.mxu0 %v554_v19  ;;  %v716_v18 = vld [vmem:[%s2462_s1 + $0x288] sm:$0xff]  ;;  %v805_v19 = vld [vmem:[%s2462_s1 + $0x310] sm:$0xff] }
  0x4d   :  { %1549 = vmatprep.subr.mxu1 %v1721_v2  ;;  %1516 = vmatprep.subr.mxu0 %v1721_v2 }
  0x4e   :  { %1512 = vmatmul.mubr.f32.vlgmr.msra.gmra.mxu1 %v450_v20  ;;  %1517 = vmatpush3.msra.mxu0 %v553_v21  ;;  %v715_v20 = vld [vmem:[%s2462_s1 + $0x280] sm:$0xff]  ;;  %v804_v21 = vld [vmem:[%s2462_s1 + $0x308] sm:$0xff] }
  0x4f   :  { %1550 = vmatpush3.msra.mxu1 %v642_v22  ;;  %1518 = vmatprep.subr.mxu0 %v1721_v2  ;;  %v714_v22 = vld [vmem:[%s2463_s0 + $0x88] sm:$0xff] }
  0x50   :  { %1551 = vmatprep.subr.mxu1 %v1721_v2  ;;  %1519 = vmatpush3.msra.mxu0 %v552_v23  ;;  %v803_v23 = vld [vmem:[%s2462_s1 + $0x300] sm:$0xff] }
  0x51   :  { %1552 = vmatpush3.msra.mxu1 %v641_v24  ;;  %1520 = vmatprep.subr.mxu0 %v1721_v2  ;;  %v802_v24 = vld [vmem:[%s2463_s0 + $0x90] sm:$0xff]  ;;  %s1724_s0 = smov 32  }
  0x52   :  { %1553 = vmatprep.subr.mxu1 %v1721_v2  ;;  %1521 = vmatpush3.msra.mxu0 %v551_v25  ;;  %v956_v25 = vld [vmem:[%s2462_s1 + $0x478] sm:$0xff] }
  0x53   :  { %1554 = vmatpush3.msra.mxu1 %v640_v26  ;;  %1522 = vmatprep.subr.mxu0 %v1721_v2  ;;  %v955_v26 = vld [vmem:[%s2462_s1 + $0x470] sm:$0xff] }
  0x54   :  { %1555 = vmatprep.subr.mxu1 %v1721_v2  ;;  %1523 = vmatpush3.msra.mxu0 %v550_v27  ;;  %v954_v27 = vld [vmem:[%s2462_s1 + $0x468] sm:$0xff] }
  0x55   :  { %1556 = vmatpush3.msra.mxu1 %v639_v28  ;;  %1524 = vmatprep.subr.mxu0 %v1721_v2  ;;  %v953_v28 = vld [vmem:[%s2462_s1 + $0x460] sm:$0xff] }
  0x56   :  { %1557 = vmatprep.subr.mxu1 %v1721_v2  ;;  %1525 = vmatpush3.msra.mxu0 %v549_v29  ;;  %v952_v29 = vld [vmem:[%s2462_s1 + $0x458] sm:$0xff] }
  0x57   :  { %1558 = vmatpush3.msra.mxu1 %v638_v30  ;;  %1526 = vmatprep.subr.mxu0 %v1721_v2  ;;  %v951_v30 = vld [vmem:[%s2462_s1 + $0x450] sm:$0xff] }
  0x58   :  { %1559 = vmatprep.subr.mxu1 %v1721_v2  ;;  %1527 = vmatpush3.msra.mxu0 %v548_v31  ;;  %v950_v31 = vld [vmem:[%s2462_s1 + $0x448] sm:$0xff] }
  0x59   :  { %1560 = vmatpush3.msra.mxu1 %v637_v32  ;;  %1528 = vmatprep.subr.mxu0 %v1721_v2  ;;  %v949_v32 = vld [vmem:[%s2462_s1 + $0x440] sm:$0xff] }
  0x5a   :  { %1561 = vmatprep.subr.mxu1 %v1721_v2  ;;  %1529 = vmatpush3.msra.mxu0 %v547_v33  ;;  %v948_v33 = vld [vmem:[%s2462_s1 + $0x438] sm:$0xff] }
  0x5b   :  { %1562 = vmatpush3.msra.mxu1 %v636_v34  ;;  %1530 = vmatprep.subr.mxu0 %v1721_v2  ;;  %v947_v34 = vld [vmem:[%s2462_s1 + $0x430] sm:$0xff] }
  0x5c   :  { %1563 = vmatprep.subr.mxu1 %v1721_v2  ;;  %1531 = vmatpush3.msra.mxu0 %v546_v35 }
  0x5d   :  { %1564 = vmatpush3.msra.mxu1 %v635_v36  ;;  %1532 = vmatprep.subr.mxu0 %v1721_v2 }
  0x5e   :  { %1565 = vmatprep.subr.mxu1 %v1721_v2  ;;  %1533 = vmatpush3.msra.mxu0 %v545_v37 }
  0x5f   :  { %1566 = vmatpush3.msra.mxu1 %v634_v38  ;;  %1534 = vmatprep.subr.mxu0 %v1721_v2 }
  0x60   :  { %1567 = vmatprep.subr.mxu1 %v1721_v2  ;;  %1535 = vmatpush3.msra.mxu0 %v544_v39 }
  0x61   :  { %1568 = vmatpush3.msra.mxu1 %v633_v40  ;;  %1536 = vmatprep.subr.mxu0 %v1721_v2  ;;  %v196_v40 = vlaneseq }
  0x62   :  { %1569 = vmatprep.subr.mxu1 %v1721_v2  ;;  %1537 = vmatpush3.msra.mxu0 %v543_v41 }
  0x63   :  { %1570 = vmatpush3.msra.mxu1 %v632_v42  ;;  %1538 = vmatprep.subr.mxu0 %v1721_v2 }
  0x64   :  { %1571 = vmatprep.subr.mxu1 %v1721_v2  ;;  %1539 = vmatpush3.msra.mxu0 %v542_v43  ;;  %v197_v43 = vshrl.u32 %v196_v40, 7 }
  0x65   :  { %1572 = vmatpush3.msra.mxu1 %v631_v44  ;;  %1540 = vmatprep.subr.mxu0 %v1721_v2 }
  0x66   :  { %1573 = vmatprep.subr.mxu1 %v1721_v2  ;;  %1541 = vmatpush3.msra.mxu0 %v541_v45 }
  0x67   :  { %1574 = vmatpush3.msra.mxu1 %v630_v46  ;;  %1542 = vmatprep.subr.mxu0 %v1721_v2 }
  0x68   :  { %1575 = vmatprep.subr.mxu1 %v1721_v2  ;;  %1543 = vmatpush3.msra.mxu0 %v540_v47  ;;  %v199_v47 = vadd.s32 16, %v197_v43 }
  0x69   :  { %1576 = vmatpush3.msra.mxu1 %v629_v48  ;;  %1544 = vmatprep.subr.mxu0 %v1721_v2 }
  0x6a   :  { %1577 = vmatprep.subr.mxu1 %v1721_v2  ;;  %1545 = vmatpush3.msra.mxu0 %v539_v49  ;;  %vm202_vm1 = vcmp.lt.s32.totalorder %v199_v47, 18 }
  0x6b   :  { %1578 = vmatpush3.msra.mxu1 %v628_v50  ;;  %1546 = vmatprep.mubr.msk.f32.mxu0 %vm1722_vm0, %v1721_v2 }
  0x6c   :  { %1579 = vmatprep.subr.mxu1 %v1721_v2  ;;  %1584 = vmatprep.subr.mxu0 %v1721_v2 }
  0x6d   :  { %1547 = vmatmul.mubr.f32.vlgmr.msra.gmra.mxu0 %v538_v51  ;;  %1580 = vmatpush3.msra.mxu1 %v627_v52 }
  0x6e   :  { %1585 = vmatpush3.msra.mxu0 %v730_v53  ;;  %1581 = vmatprep.mubr.msk.f32.mxu1 %vm1722_vm0, %v1721_v2 }
  0x6f   :  { %1586 = vmatprep.subr.mxu0 %v1721_v2  ;;  %1619 = vmatprep.subr.mxu1 %v1721_v2 }
  0x70   :  { %1582 = vmatmul.mubr.f32.vlgmr.msra.gmra.mxu1 %v626_v54  ;;  %1587 = vmatpush3.msra.mxu0 %v729_v55 }
  0x71   :  { %1620 = vmatpush3.msra.mxu1 %v818_v56  ;;  %1588 = vmatprep.subr.mxu0 %v1721_v2 }
  0x72   :  { %1621 = vmatprep.subr.mxu1 %v1721_v2  ;;  %1589 = vmatpush3.msra.mxu0 %v728_v57 }
  0x73   :  { %1622 = vmatpush3.msra.mxu1 %v817_v58  ;;  %1590 = vmatprep.subr.mxu0 %v1721_v2 }
  0x74   :  { %1623 = vmatprep.subr.mxu1 %v1721_v2  ;;  %1591 = vmatpush3.msra.mxu0 %v727_v59  ;;  %v1183_v59 = vsel %vm202_vm1, 1.0, %v1721_v2 }
  0x75   :  { %1624 = vmatpush3.msra.mxu1 %v816_v60  ;;  %1592 = vmatprep.subr.mxu0 %v1721_v2 }
  0x76   :  { %1625 = vmatprep.subr.mxu1 %v1721_v2  ;;  %1593 = vmatpush3.msra.mxu0 %v726_v61 }
  0x77   :  { %1626 = vmatpush3.msra.mxu1 %v815_v62  ;;  %1594 = vmatprep.subr.mxu0 %v1721_v2  ;;  %v191_v54 = vpop.permute.xlu0 %190 }
  0x78   :  { %1627 = vmatprep.subr.mxu1 %v1721_v2  ;;  %1595 = vmatpush3.msra.mxu0 %v725_v63 }
  0x79   :  { %1628 = vmatpush3.msra.mxu1 %v814_v0  ;;  %1596 = vmatprep.subr.mxu0 %v1721_v2 }
  0x7a   :  { %1629 = vmatprep.subr.mxu1 %v1721_v2  ;;  %1597 = vmatpush3.msra.mxu0 %v724_v1 }
  0x7b   :  { %1630 = vmatpush3.msra.mxu1 %v813_v3  ;;  %1598 = vmatprep.subr.mxu0 %v1721_v2 }
  0x7c   :  { %1631 = vmatprep.subr.mxu1 %v1721_v2  ;;  %1599 = vmatpush3.msra.mxu0 %v723_v4 }
  0x7d   :  { %1632 = vmatpush3.msra.mxu1 %v812_v5  ;;  %1600 = vmatprep.subr.mxu0 %v1721_v2 }
  0x7e   :  { %1633 = vmatprep.subr.mxu1 %v1721_v2  ;;  %1601 = vmatpush3.msra.mxu0 %v722_v6 }
  0x7f   :  { %1634 = vmatpush3.msra.mxu1 %v811_v7  ;;  %1602 = vmatprep.subr.mxu0 %v1721_v2 }
  0x80   :  { %1635 = vmatprep.subr.mxu1 %v1721_v2  ;;  %1603 = vmatpush3.msra.mxu0 %v721_v8 }
  0x81   :  { %1636 = vmatpush3.msra.mxu1 %v810_v9  ;;  %1604 = vmatprep.subr.mxu0 %v1721_v2 }
  0x82   :  { %1637 = vmatprep.subr.mxu1 %v1721_v2  ;;  %1605 = vmatpush3.msra.mxu0 %v720_v10 }
  0x83   :  { %1638 = vmatpush3.msra.mxu1 %v809_v11  ;;  %1606 = vmatprep.subr.mxu0 %v1721_v2 }
  0x84   :  { %1639 = vmatprep.subr.mxu1 %v1721_v2  ;;  %1607 = vmatpush3.msra.mxu0 %v719_v12 }
  0x85   :  { %1640 = vmatpush3.msra.mxu1 %v808_v13  ;;  %1608 = vmatprep.subr.mxu0 %v1721_v2  ;;  %v268_v40 = vpop.permute.xlu1 %267 }
  0x86   :  { %1641 = vmatprep.subr.mxu1 %v1721_v2  ;;  %1609 = vmatpush3.msra.mxu0 %v718_v14 }
  0x87   :  { %1642 = vmatpush3.msra.mxu1 %v807_v15  ;;  %1610 = vmatprep.subr.mxu0 %v1721_v2 }
  0x88   :  { %1643 = vmatprep.subr.mxu1 %v1721_v2  ;;  %1611 = vmatpush3.msra.mxu0 %v717_v16 }
  0x89   :  { %1644 = vmatpush3.msra.mxu1 %v806_v17  ;;  %1612 = vmatprep.subr.mxu0 %v1721_v2 }
  0x8a   :  { %1645 = vmatprep.subr.mxu1 %v1721_v2  ;;  %1613 = vmatpush3.msra.mxu0 %v716_v18 }
  0x8b   :  { %1646 = vmatpush3.msra.mxu1 %v805_v19  ;;  %1614 = vmatprep.subr.mxu0 %v1721_v2 }
  0x8c   :  { %1647 = vmatprep.subr.mxu1 %v1721_v2  ;;  %1615 = vmatpush3.msra.mxu0 %v715_v20 }
  0x8d   :  { %1616 = vmatprep.mubr.msk.f32.mxu0 %vm1722_vm0, %v1721_v2  ;;  %1648 = vmatpush3.msra.mxu1 %v804_v21 }
  0x8e   :  { %1617 = vmatmul.mubr.f32.vlgmr.msra.gmra.mxu0 %v714_v22  ;;  %1649 = vmatprep.subr.mxu1 %v1721_v2 }
  0x8f   :  { %1651 = vmatprep.mubr.msk.f32.mxu1 %vm1722_vm0, %v1721_v2  ;;  %1650 = vmatpush3.msra.mxu1 %v803_v23 }
  0x90   :  { %1654 = vmatprep.subr.mxu0 %v1721_v2  ;;  %1652 = vmatmul.mubr.f32.vlgmr.msra.gmra.mxu1 %v802_v24 }
  0x91   :  { %1686 = vmatprep.mubr.msk.f32.mxu0 %vm1722_vm0, %v1721_v2  ;;  %1655 = vmatpush3.msra.mxu0 %v956_v25 }
  0x92   :  { %1656 = vmatprep.subr.mxu0 %v1721_v2 }
  0x93   :  { %1657 = vmatpush3.msra.mxu0 %v955_v26 }
  0x94   :  { %1658 = vmatprep.subr.mxu0 %v1721_v2 }
  0x95   :  { %1659 = vmatpush3.msra.mxu0 %v954_v27 }
  0x96   :  { %1660 = vmatprep.subr.mxu0 %v1721_v2 }
  0x97   :  { %1661 = vmatpush3.msra.mxu0 %v953_v28 }
  0x98   :  { %1662 = vmatprep.subr.mxu0 %v1721_v2 }
  0x99   :  { %1663 = vmatpush3.msra.mxu0 %v952_v29 }
  0x9a   :  { %1664 = vmatprep.subr.mxu0 %v1721_v2 }
  0x9b   :  { %1665 = vmatpush3.msra.mxu0 %v951_v30 }
  0x9c   :  { %1666 = vmatprep.subr.mxu0 %v1721_v2 }
  0x9d   :  { %1667 = vmatpush3.msra.mxu0 %v950_v31 }
  0x9e   :  { %1668 = vmatprep.subr.mxu0 %v1721_v2 }
  0x9f   :  { %1669 = vmatpush3.msra.mxu0 %v949_v32 }
  0xa0   :  { %1670 = vmatprep.subr.mxu0 %v1721_v2 }
  0xa1   :  { %1671 = vmatpush3.msra.mxu0 %v948_v33 }
  0xa2   :  { %1672 = vmatprep.subr.mxu0 %v1721_v2 }
  0xa3   :  { %1673 = vmatpush3.msra.mxu0 %v947_v34 }
  0xa4   :  { %1674 = vmatprep.subr.mxu0 %v1721_v2 }
  0xe2   :  { %v1393_v35 = vpop.f32.mrf.mxu0 }
  0xe4   :  { %v117_v36 = vpop.f32.mrf.mxu0 }
  0xe6   :  { %v1396_v37 = vpop.f32.mrf.mxu0 }
  0xe7   :  { %v176_v49 = vmax.f32 %v117_v36, %v1396_v37  ;;  %v946_v36 = vld [vmem:[%s2462_s1 + $0x428] sm:$0xff] }
  0xe8   :  { %v127_v38 = vpop.f32.mrf.mxu0  ;;  %1675 = vmatpush3.msra.mxu0 %v946_v36 }
  0xe9   :  { %1676 = vmatprep.subr.mxu0 %v1721_v2 }
  0xea   :  { %v1399_v39 = vpop.f32.mrf.mxu0 }
  0xeb   :  { %v178_v51 = vmax.f32 %v127_v38, %v1399_v39 }
  0xec   :  { %v137_v41 = vpop.f32.mrf.mxu0 }
  0xed   :  { %v177_v56 = vmax.f32 %v1393_v35, %v137_v41  ;;  %v257_v35 = vpop.permute.xlu0 %256  ;;  %v945_v41 = vld [vmem:[%s2462_s1 + $0x420] sm:$0xff] }
  0xee   :  { %v1402_v42 = vpop.f32.mrf.mxu0  ;;  %1677 = vmatpush3.msra.mxu0 %v945_v41 }
  0xef   :  { %1678 = vmatprep.subr.mxu0 %v1721_v2 }
  0xf0   :  { %v147_v44 = vpop.f32.mrf.mxu0 }
  0xf2   :  { %v1405_v45 = vpop.f32.mrf.mxu0 }
  0xf3   :  { %v179_v46 = vmax.f32 %v147_v44, %v1405_v45  ;;  %v944_v45 = vld [vmem:[%s2462_s1 + $0x418] sm:$0xff] }
  0xf4   :  { %v157_v48 = vpop.f32.mrf.mxu0  ;;  %1679 = vmatpush3.msra.mxu0 %v944_v45 }
  0xf5   :  { %v182_v52 = vmax.f32 %v176_v49, %v179_v46  ;;  %1680 = vmatprep.subr.mxu0 %v1721_v2 }
  0xf6   :  { %v1408_v50 = vpop.f32.mrf.mxu0 }
  0xf7   :  { %v181_v53 = vmax.f32 %v157_v48, %v1408_v50  ;;  %v193_v60 = vadd.f32 %v191_v54, %v182_v52  ;;  %v943_v48 = vld [vmem:[%s2462_s1 + $0x410] sm:$0xff]  ;;  %v942_v52 = vld [vmem:[%s2462_s1 + $0x408] sm:$0xff] }
  0xf8   :  { %v167_v55 = vpop.f32.mrf.mxu0  ;;  %1681 = vmatpush3.msra.mxu0 %v943_v48 }
  0xf9   :  { %v184_v57 = vmax.f32 %v178_v51, %v181_v53  ;;  %v180_v58 = vmax.f32 %v1402_v42, %v167_v55  ;;  %v213_v1 = vsel %vm212_vm2, %v193_v60, 0.0  ;;  %1682 = vmatprep.subr.mxu0 %v1721_v2  ;;  %v941_v53 = vld [vmem:[%s2462_s1 + $0x400] sm:$0xff] }
  0xfa   :  { %1683 = vmatpush3.msra.mxu0 %v942_v52 }
  0xfb   :  { %v195_v61 = vadd.f32 %v191_v54, %v184_v57  ;;  %v183_v62 = vmax.f32 %v177_v56, %v180_v58  ;;  %1684 = vmatprep.subr.mxu0 %v1721_v2 }
  0xfc   :  { %1685 = vmatpush3.msra.mxu0 %v941_v53 }
  0xfd   :  { %v211_v63 = vmul.f32 %v1183_v59, %v195_v61  ;;  %v194_v0 = vadd.f32 %v191_v54, %v183_v62 }
  0xff   :  { %v214_v3 = vsel %vm212_vm2, %v194_v0, 0.0  ;;  %v216_v5 = vsel %vm212_vm2, %v211_v63, 0.0 }
 0x100   :  { %v215_v4 = vadd.f32 %v214_v3, %v213_v1  ;;  %v1186_v3 = vld [vmem:[%s2462_s1 + $0x3] ss:$0 sm:$0xff] }
 0x102   :  { %v217_v6 = vadd.f32 %v216_v5, %v215_v4 }
 0x104   :  { %v218_v7 = vrot.slane %v217_v6, 4 }
 0x106   :  { %v219_v8 = vadd.f32 %v218_v7, %v217_v6  ;;  %v1187_v7 = vld [vmem:[%s2462_s1 + $0x4] ss:$0 sm:$0xff] }
 0x108   :  { %v220_v9 = vrot.slane %v219_v8, 2 }
 0x10a   :  { %v221_v10 = vadd.f32 %v220_v9, %v219_v8  ;;  %v1188_v8 = vld [vmem:[%s2462_s1 + $0x5] ss:$0 sm:$0xff]  ;;  %v1192_v9 = vld [vmem:[%s2462_s1 + $0x9] ss:$0 sm:$0xff] }
 0x10b   :  { %v446_v62 = vpop.f32.mrf.mxu0 }
 0x10c   :  { %v222_v11 = vrot.slane %v221_v10, 1 }
 0x10d   :  { %v1478_v1 = vpop.f32.mrf.mxu0 }
 0x10e   :  { %v223_v12 = vadd.f32 %v222_v11, %v221_v10 }
 0x110   :  { %v224_v13 = vmul.f32 0.055555556, %v223_v12 }
 0x112   :  { %v226_v14 = vsub.f32 %v194_v0, %v224_v13  ;;  %v225_v15 = vsub.f32 %v193_v60, %v224_v13  ;;  %v227_v16 = vsub.f32 %v195_v61, %v224_v13  ;;  %v376_v61 = vpop.f32.mrf.mxu1 }
 0x113   :  { %v447_v63 = vadd.f32 %v446_v62, %v376_v61 }
 0x114   :  { %v232_v17 = vmul.f32 %v226_v14, %v226_v14  ;;  %v230_v18 = vmul.f32 %v1183_v59, %v227_v16  ;;  %v231_v19 = vmul.f32 %v225_v15, %v225_v15  ;;  %v1443_v0 = vpop.f32.mrf.mxu1 }
 0x116   :  { %v235_v20 = vsel %vm212_vm2, %v232_v17, 0.0  ;;  %v233_v21 = vmul.f32 %v230_v18, %v230_v18  ;;  %v234_v22 = vsel %vm212_vm2, %v231_v19, 0.0  ;;  %v533_v2 = vpop.f32.mrf.mxu1  ;;  %v1190_v17 = vld [vmem:[%s2462_s1 + $0x7] ss:$0 sm:$0xff]  ;;  %v1191_v18 = vld [vmem:[%s2462_s1 + $0x8] ss:$0 sm:$0xff] }
 0x117   :  { %v236_v23 = vadd.f32 %v235_v20, %v234_v22  ;;  %v537_v5 = vadd.f32 %v533_v2, %v447_v63  ;;  %v1193_v22 = vld [vmem:[%s2462_s1 + $0xa] ss:$0 sm:$0xff] }
 0x118   :  { %v237_v24 = vsel %vm212_vm2, %v233_v21, 0.0  ;;  %v1513_v6 = vpop.f32.mrf.mxu1 }
 0x119   :  { %v238_v25 = vadd.f32 %v237_v24, %v236_v23 }
 0x11b   :  { %v239_v26 = vrot.slane %v238_v25, 4 }
 0x11d   :  { %v240_v27 = vadd.f32 %v239_v26, %v238_v25 }
 0x11f   :  { %v241_v28 = vrot.slane %v240_v27, 2 }
 0x121   :  { %v242_v29 = vadd.f32 %v241_v28, %v240_v27 }
 0x123   :  { %v243_v30 = vrot.slane %v242_v29, 1 }
 0x125   :  { %v244_v31 = vadd.f32 %v243_v30, %v242_v29 }
 0x127   :  { %v245_v32 = vmul.f32 0.055555556, %v244_v31 }
 0x129   :  { %v246_v33 = vadd.f32 1e-05, %v245_v32 }
 0x12b   :  { %1711 = vrsqrt.f32 %v246_v33 }
 0x12d   :  { %v621_v10 = vpop.f32.mrf.mxu0 }
 0x12e   :  { %v625_v11 = vadd.f32 %v621_v10, %v537_v5 }
 0x12f   :  { %v1548_v12 = vpop.f32.mrf.mxu0 }
 0x130   :  { %v709_v13 = vpop.f32.mrf.mxu1 }
 0x138   :  { %v1712_v34 = vpop.eup %1711 }
 0x139   :  { %v248_v37 = vmul.f32 %v1712_v34, %v225_v15  ;;  %v249_v38 = vmul.f32 %v1712_v34, %v226_v14  ;;  %v250_v39 = vmul.f32 %v1712_v34, %v227_v16  ;;  %v713_v14 = vadd.f32 %v709_v13, %v625_v11  ;;  %v1583_v15 = vpop.f32.mrf.mxu1  ;;  %v1189_v16 = vld [vmem:[%s2462_s1 + $0x6] ss:$0 sm:$0xff] }
 0x13b   :  { %v259_v42 = vmul.f32 %v257_v35, %v248_v37  ;;  %v260_v43 = vmul.f32 %v257_v35, %v249_v38  ;;  %v261_v44 = vmul.f32 %v257_v35, %v250_v39 }
 0x13d   :  { %v270_v46 = vadd.f32 %v268_v40, %v259_v42  ;;  %v271_v47 = vadd.f32 %v268_v40, %v260_v43  ;;  %v272_v49 = vadd.f32 %v268_v40, %v261_v44 }
 0x13f   :  { %v2386_v50 = vmax.f32 %v270_v46, 0.0  ;;  %v2388_v51 = vmax.f32 %v271_v47, 0.0  ;;  %v275_v58 = vmax.f32 %v272_v49, 0.0 }
 0x141   :  { %v962_v54 = vrot.slane %v2386_v50, 6  ;;  %v975_v55 = vrot.slane %v2388_v51, 6  ;;  %v958_v56 = vrot.slane %v2386_v50, 2  ;;  %v981_v57 = vrot.slane %v2388_v51, 2 }
 0x142   :  { %v1705_v4 = vpack.i.bf16 %v275_v58, %v2388_v51 }
 0x143   :  { %v1700_v59 = vpack.i.bf16 %v962_v54, %v975_v55  ;;  %v1695_v60 = vpack.i.bf16 %v958_v56, %v981_v57 }
 0x145   :  { %1701 = vrot.lane.b32.xlu0 %v1700_v59, %s1723_s29  ;;  %1696 = vrot.lane.b32.xlu1 %v1695_v60, %s1724_s0 }
 0x149   :  { %1706 = vrot.lane.b32.xlu1 %v1705_v4, %s1725_s18  ;;  %895 = vrot.lane.b32.xlu0 %v1186_v3, %s1723_s29 }
 0x14d   :  { %927 = vrot.lane.b32.xlu0 %v1187_v7, %s1723_s29  ;;  %1090 = vrot.lane.b32.xlu1 %v1189_v16, %s1723_s29 }
 0x14e   :  { %v797_v19 = vpop.f32.mrf.mxu0 }
 0x14f   :  { %v801_v24 = vadd.f32 %v797_v19, %v713_v14 }
 0x150   :  { %v1618_v20 = vpop.f32.mrf.mxu0  ;;  %v885_v21 = vpop.f32.mrf.mxu1 }
 0x151   :  { %936 = vrot.lane.b32.xlu0 %v1188_v8, %s1723_s29  ;;  %1121 = vrot.lane.b32.xlu1 %v1190_v17, %s1723_s29  ;;  %v889_v29 = vadd.f32 %v885_v21, %v801_v24 }
 0x152   :  { %v1653_v23 = vpop.f32.mrf.mxu1 }
 0x155   :  { %1140 = vrot.lane.b32.xlu0 %v1192_v9, %s1723_s29  ;;  %1130 = vrot.lane.b32.xlu1 %v1191_v18, %s1723_s29 }
 0x159   :  { %1152 = vrot.lane.b32.xlu1 %v1193_v22, %s1723_s29 }
 0x1b7   :  { %v1702_v25 = vpop.permute.xlu0 %1701  ;;  %v1697_v26 = vpop.permute.xlu1 %1696 }
 0x1b8   :  { %v1699_v27 = vunpack.i.h.bf16 %v1697_v26  ;;  %v1698_v28 = vunpack.i.l.bf16 %v1697_v26  ;;  %v1704_v30 = vunpack.i.h.bf16 %v1702_v25  ;;  %v1703_v31 = vunpack.i.l.bf16 %v1702_v25 }
 0x1ba   :  { %v970_v32 = vsel %vm212_vm2, %v2386_v50, %v1699_v27  ;;  %v985_v33 = vsel %vm212_vm2, %v2386_v50, %v1698_v28  ;;  %v992_v34 = vsel %vm212_vm2, %v2388_v51, %v1698_v28 }
 0x1bb   :  { %v1707_v35 = vpop.permute.xlu1 %1706  ;;  %v896_v36 = vpop.permute.xlu0 %895  ;;  %v972_v40 = vsel %vm971_vm3, %v970_v32, %v1704_v30  ;;  %v979_v41 = vsel %vm971_vm3, %v970_v32, %v1703_v31  ;;  %v986_v42 = vsel %vm971_vm3, %v985_v33, %v1703_v31  ;;  %v993_v43 = vsel %vm971_vm3, %v992_v34, %v1703_v31 }
 0x1bc   :  { %v1709_v37 = vunpack.i.h.bf16 %v1707_v35  ;;  %v1708_v38 = vunpack.i.l.bf16 %v1707_v35  ;;  %v898_v39 = vadd.f32 %v896_v36, %v889_v29 }
 0x1be   :  { %v974_v44 = vsel %vm973_vm4, %v972_v40, %v1708_v38  ;;  %v980_v45 = vsel %vm973_vm4, %v979_v41, %v1708_v38  ;;  %v987_v46 = vsel %vm973_vm4, %v986_v42, %v1708_v38  ;;  %v994_v47 = vsel %vm973_vm4, %v993_v43, %v1709_v37 }
 0x1bf   :  { %v996_v48 = vrot.slane %v987_v46, 2  ;;  %v999_v49 = vrot.slane %v994_v47, 2  ;;  %v1002_v50 = vsel %vm1001_vm5, %v974_v44, %v980_v45  ;;  %v900_v51 = vsel %vm899_vm8, %v898_v39, 0.0  ;;  %v928_v8 = vpop.permute.xlu0 %927  ;;  %v1091_v23 = vpop.permute.xlu1 %1090 }
 0x1c0   :  { %v901_v52 = vrot.slane %v900_v51, 4 }
 0x1c1   :  { %v1004_v53 = vsel %vm1003_vm6, %v1002_v50, %v996_v48 }
 0x1c2   :  { %v1006_v54 = vsel %vm1005_vm7, %v1004_v53, %v999_v49  ;;  %v902_v55 = vadd.f32 %v901_v52, %v900_v51 }
 0x1c3   :  { %1687 = vmatmul.mubr.f32.vlgmr.msra.gmra.mxu0 %v1006_v54  ;;  %v937_v10 = vpop.permute.xlu0 %936  ;;  %v1122_v45 = vpop.permute.xlu1 %1121 }
 0x1c4   :  { %v903_v56 = vrot.slane %v902_v55, 2 }
 0x1c6   :  { %v904_v57 = vadd.f32 %v903_v56, %v902_v55  ;;  %v1726_v55 = vmov 64  }
 0x1c7   :  { %v1141_v14 = vpop.permute.xlu0 %1140  ;;  %v1131_v47 = vpop.permute.xlu1 %1130  ;;  %1710 = vset.pattern.permute.xlu0 %v1726_v55 }
 0x1c8   :  { %v905_v58 = vrot.slane %v904_v57, 1 }
 0x1ca   :  { %v906_v59 = vadd.f32 %v905_v58, %v904_v57  ;;  %v1194_v57 = vld [vmem:[%s2462_s1 + $0xb] ss:$0 sm:$0xff] }
 0x1cb   :  { %v1153_v51 = vpop.permute.xlu1 %1152 }
 0x1cc   :  { %v908_v60 = vmul.f32 0.5, %v906_v59 }
 0x1ce   :  { %v909_v61 = vsub.f32 %v898_v39, %v908_v60 }
 0x1d0   :  { %v910_v62 = vmul.f32 %v909_v61, %v909_v61 }
 0x1d2   :  { %v911_v63 = vsel %vm899_vm8, %v910_v62, 0.0 }
 0x1d3   :  { %v912_v0 = vrot.slane %v911_v63, 4 }
 0x1d5   :  { %v913_v1 = vadd.f32 %v912_v0, %v911_v63 }
 0x1d7   :  { %v914_v3 = vrot.slane %v913_v1, 2 }
 0x1d9   :  { %v915_v4 = vadd.f32 %v914_v3, %v913_v1 }
 0x1db   :  { %v916_v2 = vrot.slane %v915_v4, 1 }
 0x1dd   :  { %v917_v5 = vadd.f32 %v916_v2, %v915_v4 }
 0x1df   :  { %v918_v6 = vmul.f32 0.5, %v917_v5 }
 0x1e1   :  { %v919_v7 = vadd.f32 1e-05, %v918_v6 }
 0x1e3   :  { %1713 = vrsqrt.f32 %v919_v7 }
 0x1f0   :  { %v1714_v9 = vpop.eup %1713 }
 0x1f1   :  { %v921_v11 = vmul.f32 %v1714_v9, %v909_v61 }
 0x1f3   :  { %v930_v12 = vmul.f32 %v928_v8, %v921_v11 }
 0x1f5   :  { %v939_v13 = vadd.f32 %v937_v10, %v930_v12 }
 0x1f7   :  { %v940_v15 = vmax.f32 %v939_v13, 0.0 }
 0x1f9   :  { %v1143_v16 = vmul.f32 %v1141_v14, %v940_v15 }
 0x1fb   :  { %v1144_v17 = vsel %vm899_vm8, %v1143_v16, 0.0 }
 0x1fc   :  { %1145 = vadd.xlane.f32.xlu0 %v1144_v17 }
 0x283   :  { %v1073_v18 = vpop.f32.mrf.mxu0 }
 0x284   :  { %v1078_v19 = vrot.slane %v1073_v18, 2 }
 0x285   :  { %v1688_v20 = vpop.f32.mrf.mxu0  ;;  %v1146_v56 = vpop.xlane.xlu0 %1145 }
 0x286   :  { %v1080_v21 = vmax.f32 %v1073_v18, %v1078_v19 }
 0x288   :  { %v1082_v22 = vrot.slane %v1080_v21, 4 }
 0x28a   :  { %v1084_v24 = vmax.f32 %v1080_v21, %v1082_v22 }
 0x28c   :  { %v1093_v25 = vadd.f32 %v1091_v23, %v1084_v24 }
 0x28e   :  { %v1095_v26 = vsel %vm1094_vm9, %v1093_v25, 0.0 }
 0x28f   :  { %v1096_v27 = vrot.slane %v1095_v26, 4 }
 0x291   :  { %v1097_v28 = vadd.f32 %v1096_v27, %v1095_v26 }
 0x293   :  { %v1098_v29 = vrot.slane %v1097_v28, 2 }
 0x295   :  { %v1099_v30 = vadd.f32 %v1098_v29, %v1097_v28 }
 0x297   :  { %v1100_v31 = vrot.slane %v1099_v30, 1 }
 0x299   :  { %v1101_v32 = vadd.f32 %v1100_v31, %v1099_v30 }
 0x29b   :  { %v1102_v33 = vmul.f32 0.5, %v1101_v32 }
 0x29d   :  { %v1103_v34 = vsub.f32 %v1093_v25, %v1102_v33 }
 0x29f   :  { %v1104_v35 = vmul.f32 %v1103_v34, %v1103_v34 }
 0x2a1   :  { %v1105_v36 = vsel %vm1094_vm9, %v1104_v35, 0.0 }
 0x2a2   :  { %v1106_v37 = vrot.slane %v1105_v36, 4 }
 0x2a4   :  { %v1107_v38 = vadd.f32 %v1106_v37, %v1105_v36 }
 0x2a6   :  { %v1108_v39 = vrot.slane %v1107_v38, 2 }
 0x2a8   :  { %v1109_v40 = vadd.f32 %v1108_v39, %v1107_v38 }
 0x2aa   :  { %v1110_v41 = vrot.slane %v1109_v40, 1 }
 0x2ac   :  { %v1111_v42 = vadd.f32 %v1110_v41, %v1109_v40 }
 0x2ae   :  { %v1112_v43 = vmul.f32 0.5, %v1111_v42 }
 0x2b0   :  { %v1113_v44 = vadd.f32 1e-05, %v1112_v43 }
 0x2b2   :  { %1715 = vrsqrt.f32 %v1113_v44 }
 0x2bf   :  { %v1716_v46 = vpop.eup %1715 }
 0x2c0   :  { %v1115_v48 = vmul.f32 %v1716_v46, %v1103_v34 }
 0x2c2   :  { %v1124_v49 = vmul.f32 %v1122_v45, %v1115_v48 }
 0x2c4   :  { %v1133_v50 = vadd.f32 %v1131_v47, %v1124_v49 }
 0x2c6   :  { %v1134_v52 = vmax.f32 %v1133_v50, 0.0 }
 0x2c8   :  { %v1155_v53 = vmul.f32 %v1153_v51, %v1134_v52 }
 0x2ca   :  { %v1156_v54 = vsel %vm1094_vm9, %v1155_v53, 0.0 }
 0x2cb   :  { %1157 = vadd.xlane.f32.xlu1 %v1156_v54 }
 0x354   :  { %v1158_v58 = vpop.xlane.xlu1 %1157 }
 0x355   :  { %v1159_v59 = vadd.f32 %v1158_v58, %v1146_v56 }
 0x357   :  { %v1164_v60 = vadd.f32 %v1194_v57, %v1159_v59 }
 0x359   :  { %v1165_v61 = vsub.f32 0.0, %v1164_v60 }
 0x35b   :  { %v1166_v62 = vmul.f32 0.01, %v1165_v61 }
 0x35d   :  { %v1167_v63 = vmul.f32 1.442695, %v1166_v62 }
 0x35f   :  { %1717 = vpow2.f32 %v1167_v63 }
 0x36c   :  { %v1718_v0 = vpop.eup %1717 }
 0x36d   :  { %v1169_v1 = vadd.f32 1.0, %v1718_v0 }
 0x36f   :  { %1719 = vrcp.f32 %v1169_v1 }
 0x37c   :  { %v1720_v3 = vpop.eup %1719 }
 0x37d   :  { %1173 = vperm.xlu0 %1710, %v1720_v3  }
 0x3f8   :  { %v1174_v4 = vpop.permute.xlu0 %1173 }
 0x3f9   :  { %v1176_v2 = vsel %vm1001_vm5, %v1174_v4, 0.0 }
 0x3fa   :  { %1177 = vst [vmem:[%s2464_s2] sm:$0xff] %v1176_v2 }

</bundles_post_ra>
